<compile_context>
chip_gen: v7x
topology: tpu7x:2x2x1
jax: 0.10.0
libtpu: 0.0.40
codegen_flags: <defaults>
</compile_context>

<pallas_src>
import jax
import jax.numpy as jnp
from jax.experimental import pallas as pl
from jax.experimental.pallas import tpu as pltpu


def _round_up(x, m):
    return ((x + m - 1) // m) * m


def mlp_kernel(x_ref, w1_ref, b1_ref, w2_ref, b2_ref, o_ref):
    # Hidden layer: x @ W1 + b1, ReLU.  bf16 MXU matmul, f32 accumulate.
    h = jnp.dot(x_ref[...], w1_ref[...], preferred_element_type=jnp.float32)
    h = jnp.maximum(h + b1_ref[...], 0.0)            # (TB,128)+(1,128), VPU ReLU
    # Output layer: h @ W2 + b2 (h recast to bf16 to stay on the bf16 MXU path).
    out = jnp.dot(h.astype(w2_ref.dtype), w2_ref[...],
                  preferred_element_type=jnp.float32)
    o_ref[...] = (out + b2_ref[...]).astype(o_ref.dtype)   # lane-dense (TB,128) store


def supervised_classifier(x, w1, b1, w2, b2, *, block_b=256):
    """Forward pass of SupervisedClassifier as one fused Pallas kernel.

    x:  (B, D) float32
    w1: (D, H),  b1: (H,) or (1, H)
    w2: (H, C),  b2: (C,) or (1, C)
    returns logits (B, C) float32
    """
    B, D = x.shape
    H = w1.shape[1]
    C = w2.shape[1]

    b1 = b1.reshape(1, H).astype(jnp.float32)
    b2 = b2.reshape(1, C).astype(jnp.float32)

    # Lane/sublane alignment: pad D and C to multiples of 128, batch to the tile.
    d_pad = _round_up(D, 128)                      # 784 -> 896
    c_pad = _round_up(max(C, 128), 128)            # 10  -> 128
    tb = min(block_b, _round_up(B, 128))           # batch tile (multiple of 128)
    b_pad = _round_up(B, tb)

    cdt = jnp.bfloat16
    x_p = jnp.zeros((b_pad, d_pad), cdt).at[:B, :D].set(x.astype(cdt))
    w1_p = jnp.zeros((d_pad, H), cdt).at[:D, :].set(w1.astype(cdt))
    w2_p = jnp.zeros((H, c_pad), cdt).at[:, :C].set(w2.astype(cdt))
    b2_p = jnp.zeros((1, c_pad), jnp.float32).at[:, :C].set(b2)

    grid = (b_pad // tb,)

    flops = 2 * b_pad * (d_pad * H + H * c_pad)
    bytes_accessed = (x_p.size * 2 + w1_p.size * 2 + w2_p.size * 2
                      + b1.size * 4 + b2_p.size * 4 + b_pad * c_pad * 4)

    out = pl.pallas_call(
        mlp_kernel,
        out_shape=jax.ShapeDtypeStruct((b_pad, c_pad), jnp.float32),
        grid=grid,
        in_specs=[
            pl.BlockSpec((tb, d_pad), lambda i: (i, 0)),   # x tile, pipelined
            pl.BlockSpec((d_pad, H), lambda i: (0, 0)),    # W1 resident
            pl.BlockSpec((1, H), lambda i: (0, 0)),        # b1 resident
            pl.BlockSpec((H, c_pad), lambda i: (0, 0)),    # W2 resident
            pl.BlockSpec((1, c_pad), lambda i: (0, 0)),    # b2 resident
        ],
        out_specs=pl.BlockSpec((tb, c_pad), lambda i: (i, 0)),
        compiler_params=pltpu.CompilerParams(
            dimension_semantics=("parallel",),             # shard batch across TCs (v7x)
            vmem_limit_bytes=32 * 1024 * 1024,
        ),
        cost_estimate=pl.CostEstimate(
            flops=flops, transcendentals=0, bytes_accessed=bytes_accessed),
    )(x_p, w1_p, b1, w2_p, b2_p)

    return out[:B, :C]


if __name__ == "__main__":
    # Module hyperparameters (input_dim = 28*28 as in the training script).
    input_dim = 28 * 28      # 784
    hidden = 128
    num_classes = 10
    batch = 300              # non-multiple of the tile -> exercises padding + grid=(2,)

    key = jax.random.PRNGKey(0)
    kx, kw1, kb1, kw2, kb2 = jax.random.split(key, 5)

    # Deterministic parameter init mimicking nn.Linear's U(-1/sqrt(fan_in), +).
    lim1 = 1.0 / jnp.sqrt(jnp.float32(input_dim))
    lim2 = 1.0 / jnp.sqrt(jnp.float32(hidden))
    w1 = jax.random.uniform(kw1, (input_dim, hidden), jnp.float32, -lim1, lim1)
    b1 = jax.random.uniform(kb1, (hidden,), jnp.float32, -lim1, lim1)
    w2 = jax.random.uniform(kw2, (hidden, num_classes), jnp.float32, -lim2, lim2)
    b2 = jax.random.uniform(kb2, (num_classes,), jnp.float32, -lim2, lim2)

    x = jax.random.normal(kx, (batch, input_dim), jnp.float32)

    logits = supervised_classifier(x, w1, b1, w2, b2)
    jax.block_until_ready(logits)

    # Reference in plain JAX with the same bf16 input quantization (f32 accumulate).
    bf = lambda a: a.astype(jnp.bfloat16).astype(jnp.float32)
    h_ref = jnp.maximum(bf(x) @ bf(w1) + b1[None, :], 0.0)
    ref = bf(h_ref) @ bf(w2) + b2[None, :]

    assert logits.shape == (batch, num_classes)
    assert jnp.allclose(logits, ref, atol=1e-2, rtol=1e-2)

    print("KERNEL_OK")
</pallas_src>

<mosaic_0001>
module attributes {stable_mosaic.version = 11 : i64} {
  func.func @mlp_kernel(%arg0: i32, %arg1: memref<256x896xbf16, #tpu.memory_space<vmem>>, %arg2: memref<896x128xbf16, #tpu.memory_space<vmem>>, %arg3: memref<1x128xf32, #tpu.memory_space<vmem>>, %arg4: memref<128x128xbf16, #tpu.memory_space<vmem>>, %arg5: memref<1x128xf32, #tpu.memory_space<vmem>>, %arg6: memref<256x128xf32, #tpu.memory_space<vmem>>) attributes {dimension_semantics = [#tpu.dimension_semantics<parallel>], iteration_bounds = array<i64: 2>, scalar_prefetch = 0 : i64, scratch_operands = 0 : i64, tpu.core_type = #tpu.core_type<tc>, window_params = [{transform_indices = @transform_0, window_bounds = array<i64: 256, 896>}, {pipeline_mode = #tpu.pipeline_mode<synchronous>, transform_indices = @transform_1, window_bounds = array<i64: 896, 128>}, {pipeline_mode = #tpu.pipeline_mode<synchronous>, transform_indices = @transform_2, window_bounds = array<i64: 1, 128>}, {pipeline_mode = #tpu.pipeline_mode<synchronous>, transform_indices = @transform_3, window_bounds = array<i64: 128, 128>}, {pipeline_mode = #tpu.pipeline_mode<synchronous>, transform_indices = @transform_4, window_bounds = array<i64: 1, 128>}, {transform_indices = @transform_5, window_bounds = array<i64: 256, 128>}]} {
    %c0 = arith.constant 0 : index
    %c0_0 = arith.constant 0 : index
    %0 = vector.load %arg1[%c0, %c0_0] : memref<256x896xbf16, #tpu.memory_space<vmem>>, vector<256x896xbf16>
    %c0_1 = arith.constant 0 : index
    %c0_2 = arith.constant 0 : index
    %1 = vector.load %arg2[%c0_1, %c0_2] : memref<896x128xbf16, #tpu.memory_space<vmem>>, vector<896x128xbf16>
    %cst = arith.constant dense<0.000000e+00> : vector<256x128xf32>
    %2 = tpu.matmul %0, %1, %cst {dimension_numbers = #tpu.dot_dimension_numbers<[1], [0], [0], [1], [0, 0, 1, 1], [], []>} : vector<256x896xbf16>, vector<896x128xbf16>, vector<256x128xf32> -> vector<256x128xf32>
    %c0_3 = arith.constant 0 : index
    %c0_4 = arith.constant 0 : index
    %3 = vector.load %arg3[%c0_3, %c0_4] : memref<1x128xf32, #tpu.memory_space<vmem>>, vector<1x128xf32>
    %4 = vector.broadcast %3 : vector<1x128xf32> to vector<256x128xf32>
    %5 = arith.addf %2, %4 : vector<256x128xf32>
    %cst_5 = arith.constant 0.000000e+00 : f32
    %6 = vector.broadcast %cst_5 : f32 to vector<256x128xf32>
    %7 = arith.maximumf %5, %6 : vector<256x128xf32>
    %8 = arith.truncf %7 : vector<256x128xf32> to vector<256x128xbf16>
    %c0_6 = arith.constant 0 : index
    %c0_7 = arith.constant 0 : index
    %9 = vector.load %arg4[%c0_6, %c0_7] : memref<128x128xbf16, #tpu.memory_space<vmem>>, vector<128x128xbf16>
    %cst_8 = arith.constant dense<0.000000e+00> : vector<256x128xf32>
    %10 = tpu.matmul %8, %9, %cst_8 {dimension_numbers = #tpu.dot_dimension_numbers<[1], [0], [0], [1], [0, 0, 1, 1], [], []>} : vector<256x128xbf16>, vector<128x128xbf16>, vector<256x128xf32> -> vector<256x128xf32>
    %c0_9 = arith.constant 0 : index
    %c0_10 = arith.constant 0 : index
    %11 = vector.load %arg5[%c0_9, %c0_10] : memref<1x128xf32, #tpu.memory_space<vmem>>, vector<1x128xf32>
    %12 = vector.broadcast %11 : vector<1x128xf32> to vector<256x128xf32>
    %13 = arith.addf %10, %12 : vector<256x128xf32>
    %c0_11 = arith.constant 0 : index
    %c0_12 = arith.constant 0 : index
    %14 = vector.load %arg6[%c0_11, %c0_12] : memref<256x128xf32, #tpu.memory_space<vmem>>, vector<256x128xf32>
    tpu.vector_store %arg6[%c0_11, %c0_12], %13 {strides = array<i32>} : memref<256x128xf32, #tpu.memory_space<vmem>>, vector<256x128xf32>,
    return
  }
  func.func @transform_0(%arg0: i32) -> (i32, i32) {
    %c0_i32 = arith.constant 0 : i32
    %c0_i32_0 = arith.constant 0 : i32
    return %arg0, %c0_i32 : i32, i32
  }
  func.func @transform_1(%arg0: i32) -> (i32, i32) {
    %c0_i32 = arith.constant 0 : i32
    %c0_i32_0 = arith.constant 0 : i32
    %c0_i32_1 = arith.constant 0 : i32
    return %c0_i32, %c0_i32_0 : i32, i32
  }
  func.func @transform_2(%arg0: i32) -> (i32, i32) {
    %c0_i32 = arith.constant 0 : i32
    %c0_i32_0 = arith.constant 0 : i32
    %c0_i32_1 = arith.constant 0 : i32
    return %c0_i32, %c0_i32_0 : i32, i32
  }
  func.func @transform_3(%arg0: i32) -> (i32, i32) {
    %c0_i32 = arith.constant 0 : i32
    %c0_i32_0 = arith.constant 0 : i32
    %c0_i32_1 = arith.constant 0 : i32
    return %c0_i32, %c0_i32_0 : i32, i32
  }
  func.func @transform_4(%arg0: i32) -> (i32, i32) {
    %c0_i32 = arith.constant 0 : i32
    %c0_i32_0 = arith.constant 0 : i32
    %c0_i32_1 = arith.constant 0 : i32
    return %c0_i32, %c0_i32_0 : i32, i32
  }
  func.func @transform_5(%arg0: i32) -> (i32, i32) {
    %c0_i32 = arith.constant 0 : i32
    %c0_i32_0 = arith.constant 0 : i32
    return %arg0, %c0_i32 : i32, i32
  }
}

</mosaic_0001>

<bundles_post_ra>
// kernel: tpu_custom_call.1
= control target key start
LH: loop header
LB: loop body
LE: loop exit
PB: predicated region body
PF: predicated region fallthrough
CT: control target
= control target key end

     0   :  { %10 = vsyncpa [#allocation3], 0  ;;  %s4279_s0 = inlined_call_operand.hbm [shape: bf16[512,896], index: 0, kind: input, shape index: {}]   ;;  %s4280_s1 = inlined_call_operand.hbm [shape: bf16[896,128], index: 1, kind: input, shape index: {}]   ;;  %s4281_s2 = inlined_call_operand.vmem [shape: f32[1,128], index: 2, kind: input, shape index: {}]   ;;  %s4282_s3 = inlined_call_operand.hbm [shape: bf16[128,128], index: 3, kind: input, shape index: {}]   ;;  %s4283_s4 = inlined_call_operand.vmem [shape: f32[1,128], index: 4, kind: input, shape index: {}]   ;;  %s4284_s5 = inlined_call_operand.hbm [shape: f32[512,128], index: 5, kind: output, shape index: {}]  }
   0x1   :  { %12 = vsyncpa [#allocation3 + $0x1], 0 }
   0x2   :  { %13 = vsyncpa [#allocation6], 0 }
   0x3   :  { %14 = vsyncpa [#allocation4], 0 }
   0x4   :  { %16 = vsyncpa [#allocation4 + $0x1], 0  ;;  %s3671_s18 = smov 0   ;;  %s3673_s19 = smov 0  }
   0x5   :  { %s3675_s20 = smov 0   ;;  %s3677_s21 = smov 0  }
   0x6 LB: > { %s3692_s22 = sadd.s32 4294967295, %s3629_s21   ;;  %s2497_s23 = sadd.s32 4294967294, %s3629_s21   ;;  %s3629_s21 = sphi %s3677_s21, %s4304_s21   ;;  %s3625_s20 = sphi %s3675_s20, %s4303_s20   ;;  %s3621_s19 = sphi %s3673_s19, %s4302_s19   ;;  %s3617_s18 = sphi %s3671_s18, %s4301_s18  }
   0x7   : > { %p42_p0 = scmp.ne.s32.totalorder %s3621_s19, %s3617_s18  ;;  %p4285_p1 = scmp.eq.s32.totalorder %s3692_s22, 0 }
   0x8   : > { %p156_p3 = scmp.eq.s32.totalorder %s2497_s23, 1  ;;  %p2498_p5 = scmp.ge.s32.totalorder %s3629_s21, 1 }
   0x9   : > { %p3701_p4 = por %p4285_p1, %p42_p0  ;;  %p163_p7 = scmp.lt.s32.totalorder %s3629_s21, 3 }
   0xa   : > { %p3706_p6 = por %p156_p3, %p42_p0  ;;  %s3631_s27 = smov [#allocation5]  }
   0xb   : > { %s4288_s24 = scalar_select %p3701_p4, 1, 0 }
   0xc   : > { %s4289_s25 = scalar_select %p3706_p6, 1, 0 }
   0xd   : > { %p3711_p8 = pnand %p2498_p5, %p163_p7  ;;  %s175_s28 = sshll.u32 %s3631_s27, 4  ;;  %s3715_s28 = int_to_ptr.vmem [resolvable:$true] %s175_s28 }
   0xe   : > { %s3632_s30 = smov [#allocation7]   ;;  %s3473_s9 = scalar_lea.hbm %s4280_s1, 7168 }
   0xf   : > { %p3188_p9 = pneg %p3711_p8  ;;  %s191_s6 = sshll.u32 %s3632_s30, 4  ;;  %s3726_s6 = int_to_ptr.vmem [resolvable:$true] %s191_s6 }
  0x10   : > { %p3474_p12 = scmp.ne.s32.totalorder %s4280_s1, %s3473_s9  ;;  %p3480_p5 = scmp.lt.u32.totalorder %s3473_s9, %s4280_s1 }
  0x11   : > { %p3722_p11 = pnand %p3188_p9, %p4285_p1 }
  0x13   : > { %p3475_p13 = pneg %p3722_p11 }
  0x15   : > { %p3476_p0 = pnand %p3475_p13, %p3474_p12 }
  0x17   : > { %p3477_p3 = pneg %p3476_p0 }
  0x19   : > { %p3482_p7 = pnand %p3480_p5, %p3477_p3 }
  0x1b   : > { %3485 = shalt.err (!%p3482_p7)
}
  0x1c   : > { %s3486_s14 = scalar_lea.vmem %s3715_s28, 7168  ;;  %p3494_p2 = scmp.lt.s32.totalorder %s3715_s28, %s3715_s28 }
  0x1d   : > { %p3487_p9 = scmp.ne.s32.totalorder %s3715_s28, %s3486_s14  ;;  %p3495_p12 = scmp.lt.s32.totalorder %s3486_s14, %s3486_s14 }
  0x1f   : > { %p3489_p10 = pnand %p3487_p9, %p3475_p13  ;;  %p3496_p0 = por %p3495_p12, %p3494_p2 }
  0x21   : > { %p3490_p1 = pneg %p3489_p10 }
  0x23   : > { %p3497_p6 = pnand %p3496_p0, %p3490_p1 }
  0x25   : > { %3500 = shalt.err (!%p3497_p6)
}
  0x26   : > { %s3633_s15 = smov 64   ;;  %s3634_s16 = smov 4  }
  0x27   : > { %3191 = dma.hbm_to_vmem [thread:$0]  (!%p3722_p11), %s4280_s1, 7168, %s3715_s28, [#allocation6], %s3633_s15, %s3633_s15, %s3634_s16  }
  0x28   : > { %s3501_s7 = scalar_lea.hbm %s4282_s3, 1024 }
  0x29   : > { %p3502_p2 = scmp.ne.s32.totalorder %s4282_s3, %s3501_s7  ;;  %p3508_p10 = scmp.lt.u32.totalorder %s3501_s7, %s4282_s3 }
  0x2b   : > { %p3504_p1 = pnand %p3502_p2, %p3475_p13 }
  0x2d   : > { %p3505_p6 = pneg %p3504_p1 }
  0x2f   : > { %p3510_p3 = pnand %p3508_p10, %p3505_p6 }
  0x31   : > { %3513 = shalt.err (!%p3510_p3)
}
  0x32   : > { %s3514_s28 = scalar_lea.vmem %s3726_s6, 1024  ;;  %p3522_p12 = scmp.lt.s32.totalorder %s3726_s6, %s3726_s6 }
  0x33   : > { %p3515_p5 = scmp.ne.s32.totalorder %s3726_s6, %s3514_s28  ;;  %p3523_p0 = scmp.lt.s32.totalorder %s3514_s28, %s3514_s28 }
  0x35   : > { %p3517_p7 = pnand %p3515_p5, %p3475_p13  ;;  %p3524_p2 = por %p3523_p0, %p3522_p12 }
  0x37   : > { %p3518_p9 = pneg %p3517_p7 }
  0x39   : > { %p3525_p1 = pnand %p3524_p2, %p3518_p9 }
  0x3b   : > { %3528 = shalt.err (!%p3525_p1)
}
  0x3c   : > { %3194 = dma.hbm_to_vmem [thread:$0]  (!%p3722_p11), %s4282_s3, 1024, %s3726_s6, [#allocation6], %s3633_s15, %s3633_s15, %s3634_s16  }
  0x3d   : > { %s3781_s14 = sadd.s32 1, %s3629_s21   ;;  %s29_s29 = sadd.s32 1, %s3625_s20 }
  0x3e   : > { %s26_s17 = ssub.s32 %s3629_s21, %s3781_s14  ;;  %p36_p13 = scmp.ne.s32.totalorder %s3625_s20, %s3621_s19 }
  0x3f   : > { %p27_p6 = scmp.eq.s32.totalorder %s26_s17, 0  ;;  %p37_p10 = scmp.eq.s32.totalorder %s3629_s21, 0 }
  0x40   : > { %p4292_p3 = scmp.eq.s32.totalorder %s3692_s22, 1  ;;  %p3205_p7 = scmp.lt.s32.totalorder %s3629_s21, 2 }
  0x41   : > { %s3797_s27 = scalar_select %p27_p6, %s3625_s20, %s29_s29  }
  0x42   : > { %p3791_p5 = por %p4292_p3, %p36_p13  ;;  %p38_p9 = por %p37_p10, %p36_p13 }
  0x43   : > { %s208_s30 = sand.u32 1, %s3625_s20   ;;  %s3174_s6 = smul.u32 14336, %s3629_s21 }
  0x44   : > { %s4293_s23 = scalar_select %p3791_p5, 1, 0 }
  0x45   : > { %s3173_s7 = smul.u32 896, %s208_s30  ;;  %p3801_p11 = pnand %p3205_p7, %p38_p9 }
  0x46   : > { %s3808_s9 = scalar_lea.hbm %s4279_s0, %s3174_s6  ;;  %s3812_s28 = scalar_lea.sflag [#allocation3], %s208_s30 }
  0x47   : > { %s212_s10 = scalar_lea.vmem [#allocation2], %s3173_s7  ;;  %s3529_s12 = scalar_lea.hbm %s3808_s9, 14336 }
  0x48   : > { %s220_s11 = sshll.u32 %s212_s10, 4  ;;  %p3530_p12 = scmp.ne.s32.totalorder %s3808_s9, %s3529_s12  ;;  %s3810_s11 = int_to_ptr.vmem [resolvable:$true] %s220_s11 }
  0x49   : > { %p3531_p0 = pneg %p3801_p11  ;;  %s3534_s17 = scalar_lea.hbm %s4279_s0, 28672 }
  0x4a   : > { %p3535_p13 = scmp.lt.u32.totalorder %s3808_s9, %s4279_s0  ;;  %p3536_p6 = scmp.lt.u32.totalorder %s3534_s17, %s3529_s12 }
  0x4b   : > { %p3532_p2 = pnand %p3531_p0, %p3530_p12  ;;  %p3538_p3 = scmp.lt.u32.totalorder %s3529_s12, %s3808_s9 }
  0x4c   : > { %p3537_p10 = por %p3536_p6, %p3535_p13 }
  0x4d   : > { %p3533_p1 = pneg %p3532_p2 }
  0x4e   : > { %p3539_p7 = por %p3538_p3, %p3537_p10 }
  0x50   : > { %p3540_p9 = pnand %p3539_p7, %p3533_p1 }
  0x52   : > { %3543 = shalt.err (!%p3540_p9)
}
  0x53   : > { %s3544_s30 = scalar_lea.vmem %s3810_s11, 14336  ;;  %s3635_s7 = smov [#allocation2]  }
  0x54   : > { %p3545_p12 = scmp.ne.s32.totalorder %s3810_s11, %s3544_s30  ;;  %s3549_s8 = sshll.u32 %s3635_s7, 4  ;;  %s3550_s8 = int_to_ptr.vmem [resolvable:$false] %s3549_s8 }
  0x55   : > { %s3551_s10 = scalar_lea.vmem %s3550_s8, 28672  ;;  %p3552_p4 = scmp.lt.s32.totalorder %s3810_s11, %s3550_s8 }
  0x56   : > { %p3547_p2 = pnand %p3545_p12, %p3531_p0  ;;  %p3553_p13 = scmp.lt.s32.totalorder %s3551_s10, %s3544_s30 }
  0x58   : > { %p3548_p5 = pneg %p3547_p2  ;;  %p3554_p6 = por %p3553_p13, %p3552_p4 }
  0x5a   : > { %p3555_p10 = pnand %p3554_p6, %p3548_p5 }
  0x5c   : > { %3558 = shalt.err (!%p3555_p10)
}
  0x5d   : > { %s3636_s12 = smov 448   ;;  %s3637_s13 = smov 28  }
  0x5e   : > { %3198 = dma.hbm_to_vmem [thread:$0]  (!%p3801_p11), %s3808_s9, 14336, %s3810_s11, %s3812_s28, %s3636_s12, %s3636_s12, %s3637_s13  }
  0x5f   : > { %232 = sbr.rel (%p3711_p8) target bundleno = 844 (0x34c), region = 40  ;;  %s3843_s29 = sand.u32 (!%p3711_p8), 1, %s3621_s19  }
  0x60   : > { %s3175_s17 = smul.u32 (!%p3711_p8), 896, %s3843_s29  ;;  %s235_s6 = scalar_lea.sflag (!%p3711_p8), [#allocation3], %s3843_s29 }
  0x61   : > { %p4295_p4 = scmp.ne.s32.totalorder (!%p3711_p8), %s4288_s24, 0 }
  0x62   : > { %s3847_s16 = scalar_lea.vmem (!%p3711_p8), [#allocation2], %s3175_s17 }
  0x66   : > { %3604 = dma.done.wait (%p4295_p4), %s235_s6, 14336  }
  0x67   : > { %3606 = vsyncadd (%p4295_p4), %s235_s6, 4294952960  ;;  %p4296_p5 = scmp.eq.s32.totalorder %s3692_s22, 0 }
  0x69   : > { %3608 = dma.done.wait (%p4296_p5), [#allocation6], 8192   ;;  %p4297_p8 = pmov %p4296_p5 }
  0x6a   : > { %v3249_v0 = vld [vmem:[#allocation5 + $0x40] sm:$0xff]   ;;  %v3253_v4 = vld [vmem:[#allocation5 + $0x48] sm:$0xff]   ;;  %v3257_v8 = vld [vmem:[#allocation5 + $0x50] sm:$0xff]   ;;  %s2508_s15 = sshll.u32 %s3843_s29, 8  ;;  %s2692_s30 = sshll.u32 %s3692_s22, 12 }
  0x6b   : > { %3610 = vsyncadd (%p4297_p8), [#allocation6], 4294959104  ;;  %v3250_v1 = vld [vmem:[#allocation5] sm:$0xff]   ;;  %2693 = vmatprep.subr.bf16.mxu0 %v3249_v0  ;;  %v3254_v5 = vld [vmem:[#allocation5 + $0x8] sm:$0xff]   ;;  %s4164_s28 = scalar_lea.vmem [#allocation8], %s2508_s15  ;;  %s4229_s12 = scalar_lea.hbm %s4284_s5, %s2692_s30 }
  0x6c   : > { %v3251_v2 = vld [vmem:[#allocation5 + $0xc0] sm:$0xff]   ;;  %2694 = vmatpush3.bf16.msra.mxu0 %v3250_v1  ;;  %v3255_v6 = vld [vmem:[#allocation5 + $0xc8] sm:$0xff]   ;;  %v3258_v9 = vld [vmem:[#allocation5 + $0x10] sm:$0xff]   ;;  %s2405_s7 = sshll.u32 %s4164_s28, 4  ;;  %s2392_s22 = scalar_lea.sflag [#allocation4], %s3843_s29  ;;  %s4231_s7 = int_to_ptr.vmem [resolvable:$true] %s2405_s7 }
  0x6d   : > { %v3252_v3 = vld [vmem:[#allocation5 + $0x80] sm:$0xff]   ;;  %2805 = vmatprep.subr.bf16.mxu1 %v3251_v2  ;;  %2695 = vmatprep.subr.bf16.mxu0 %v3253_v4  ;;  %v3256_v7 = vld [vmem:[#allocation5 + $0x88] sm:$0xff]   ;;  %v3259_v10 = vld [vmem:[#allocation5 + $0xd0] sm:$0xff]   ;;  %s3559_s13 = scalar_lea.vmem %s4231_s7, 4096  ;;  %p4298_p0 = scmp.ne.s32.totalorder %s4293_s23, 0 }
  0x6e   : > { %2806 = vmatpush3.bf16.msra.mxu1 %v3252_v3  ;;  %v3260_v11 = vld [vmem:[#allocation5 + $0x90] sm:$0xff]   ;;  %v3261_v12 = vld [vmem:[#allocation5 + $0x58] sm:$0xff]   ;;  %v3265_v16 = vld [vmem:[#allocation5 + $0x60] sm:$0xff]   ;;  %p3560_p11 = scmp.ne.s32.totalorder %s4231_s7, %s3559_s13  ;;  %s3638_s17 = smov [#allocation8]  }
  0x6f   : > { %2807 = vmatprep.subr.bf16.mxu1 %v3255_v6  ;;  %v3262_v13 = vld [vmem:[#allocation5 + $0x18] sm:$0xff]   ;;  %v3266_v17 = vld [vmem:[#allocation5 + $0x20] sm:$0xff]   ;;  %v3269_v20 = vld [vmem:[#allocation5 + $0x68] sm:$0xff]   ;;  %s3563_s6 = sshll.u32 %s3638_s17, 4  ;;  %s3564_s6 = int_to_ptr.vmem [resolvable:$false] %s3563_s6 }
  0x70   : > { %2696 = vmatpush3.bf16.msra.mxu0 %v3254_v5  ;;  %v3263_v14 = vld [vmem:[#allocation5 + $0xd8] sm:$0xff]   ;;  %v3267_v18 = vld [vmem:[#allocation5 + $0xe0] sm:$0xff]   ;;  %v3270_v21 = vld [vmem:[#allocation5 + $0x28] sm:$0xff]   ;;  %p3561_p1 = pnand %p3560_p11, %p4298_p0  ;;  %p3566_p7 = scmp.lt.s32.totalorder %s4231_s7, %s3564_s6 }
  0x71   : > { %2697 = vmatprep.subr.bf16.mxu0 %v3257_v8  ;;  %v3264_v15 = vld [vmem:[#allocation5 + $0x98] sm:$0xff]   ;;  %v3268_v19 = vld [vmem:[#allocation5 + $0xa0] sm:$0xff]   ;;  %v3271_v22 = vld [vmem:[#allocation5 + $0xe8] sm:$0xff]  }
  0x72   : > { %2808 = vmatpush3.bf16.msra.mxu1 %v3256_v7  ;;  %v3272_v23 = vld [vmem:[#allocation5 + $0xa8] sm:$0xff]   ;;  %v3273_v24 = vld [vmem:[#allocation5 + $0x70] sm:$0xff]   ;;  %v3277_v28 = vld [vmem:[#allocation5 + $0x78] sm:$0xff]   ;;  %p3562_p3 = pneg %p3561_p1 }
  0x73   : > { %2809 = vmatprep.subr.bf16.mxu1 %v3259_v10  ;;  %v3274_v25 = vld [vmem:[#allocation5 + $0x30] sm:$0xff]   ;;  %v3278_v29 = vld [vmem:[#allocation5 + $0x38] sm:$0xff]   ;;  %v3282_v32 = vld [vmem:[%s3847_s16 + $0x4] ss:$28 sps:$4 sm:$0xff]  }
  0x74   : > { %2698 = vmatpush3.bf16.msra.mxu0 %v3258_v9  ;;  %v3275_v26 = vld [vmem:[#allocation5 + $0xf0] sm:$0xff]   ;;  %v3279_v30 = vld [vmem:[#allocation5 + $0xf8] sm:$0xff]   ;;  %1467 = vmatprep.mubr.bf16.mxu0 %v3282_v32  ;;  %v3284_v34 = vld [vmem:[#allocation5 + $0x140] sm:$0xff]  }
  0x75   : > { %2699 = vmatprep.subr.bf16.mxu0 %v3261_v12  ;;  %v3276_v27 = vld [vmem:[#allocation5 + $0xb0] sm:$0xff]   ;;  %v3280_v31 = vld [vmem:[%s3847_s16] ss:$28 sps:$4 sm:$0xff]   ;;  %v3285_v35 = vld [vmem:[%s3847_s16 + $0x8] ss:$28 sps:$4 sm:$0xff]  }
  0x76   : > { %2810 = vmatpush3.bf16.msra.mxu1 %v3260_v11  ;;  %v3283_v33 = vld [vmem:[#allocation5 + $0xb8] sm:$0xff]   ;;  %v3287_v36 = vld [vmem:[%s3847_s16 + $0xc] ss:$28 sps:$4 sm:$0xff]   ;;  %v3288_v37 = vld [vmem:[#allocation5 + $0x100] sm:$0xff]  }
  0x77   : > { %2811 = vmatprep.subr.bf16.mxu1 %v3263_v14  ;;  %1628 = vmatprep.mubr.bf16.mxu1 %v3287_v36  ;;  %v3289_v38 = vld [vmem:[%s3847_s16 + $0x3c] ss:$28 sps:$4 sm:$0xff]   ;;  %v3292_v39 = vld [vmem:[%s3847_s16 + $0x44] ss:$28 sps:$4 sm:$0xff]   ;;  %v3295_v41 = vld [vmem:[%s3847_s16 + $0x74] ss:$28 sps:$4 sm:$0xff]  }
  0x78   : > { %2700 = vmatpush3.bf16.msra.mxu0 %v3262_v13  ;;  %v3291_v40 = vld [vmem:[%s3847_s16 + $0x38] ss:$28 sps:$4 sm:$0xff]   ;;  %v3298_v42 = vld [vmem:[#allocation5 + $0x148] sm:$0xff]   ;;  %v3294_v43 = vld [vmem:[%s3847_s16 + $0x40] ss:$28 sps:$4 sm:$0xff]  }
  0x79   : > { %2701 = vmatprep.subr.bf16.mxu0 %v3265_v16  ;;  %v3299_v44 = vld [vmem:[%s3847_s16 + $0x7c] ss:$28 sps:$4 sm:$0xff]   ;;  %v3301_v45 = vld [vmem:[#allocation5 + $0x108] sm:$0xff]   ;;  %v3312_v48 = vld [vmem:[#allocation5 + $0x150] sm:$0xff]  }
  0x7a   : > { %2812 = vmatpush3.bf16.msra.mxu1 %v3264_v15  ;;  %v3297_v46 = vld [vmem:[%s3847_s16 + $0x70] ss:$28 sps:$4 sm:$0xff]   ;;  %v3302_v49 = vld [vmem:[%s3847_s16 + $0x78] ss:$28 sps:$4 sm:$0xff]   ;;  %v3305_v52 = vld [vmem:[%s3847_s16 + $0xa8] ss:$28 sps:$4 sm:$0xff]  }
  0x7b   : > { %2813 = vmatprep.subr.bf16.mxu1 %v3267_v18  ;;  %v3303_v47 = vld [vmem:[%s3847_s16 + $0xac] ss:$28 sps:$4 sm:$0xff]   ;;  %v3315_v50 = vld [vmem:[#allocation5 + $0x110] sm:$0xff]   ;;  %v3309_v53 = vld [vmem:[%s3847_s16 + $0xe4] ss:$28 sps:$4 sm:$0xff]  }
  0x7c   : > { %2702 = vmatpush3.bf16.msra.mxu0 %v3266_v17  ;;  %v3306_v51 = vld [vmem:[%s3847_s16 + $0xb4] ss:$28 sps:$4 sm:$0xff]   ;;  %v3326_v54 = vld [vmem:[#allocation5 + $0x158] sm:$0xff]   ;;  %v3313_v57 = vld [vmem:[%s3847_s16 + $0xec] ss:$28 sps:$4 sm:$0xff]  }
  0x7d   : > { %2703 = vmatprep.subr.bf16.mxu0 %v3269_v20  ;;  %v3308_v55 = vld [vmem:[%s3847_s16 + $0xb0] ss:$28 sps:$4 sm:$0xff]   ;;  %v3329_v56 = vld [vmem:[#allocation5 + $0x118] sm:$0xff]   ;;  %v3340_v59 = vld [vmem:[#allocation5 + $0x160] sm:$0xff]  }
  0x7e   : > { %2814 = vmatpush3.bf16.msra.mxu1 %v3268_v19  ;;  %v3311_v58 = vld [vmem:[%s3847_s16 + $0xe0] ss:$28 sps:$4 sm:$0xff]   ;;  %v3316_v61 = vld [vmem:[%s3847_s16 + $0xe8] ss:$28 sps:$4 sm:$0xff]   ;;  %v3319_v1 = vld [vmem:[%s3847_s16 + $0x118] ss:$28 sps:$4 sm:$0xff]  }
  0x7f   : > { %2815 = vmatprep.subr.bf16.mxu1 %v3271_v22  ;;  %v3317_v60 = vld [vmem:[%s3847_s16 + $0x11c] ss:$28 sps:$4 sm:$0xff]   ;;  %v3343_v62 = vld [vmem:[#allocation5 + $0x120] sm:$0xff]   ;;  %v3355_v2 = vld [vmem:[#allocation5 + $0x168] sm:$0xff]  }
  0x80   : > { %2704 = vmatpush3.bf16.msra.mxu0 %v3270_v21  ;;  %v3345_v63 = vld [vmem:[#allocation5 + $0x180] sm:$0xff]   ;;  %v3323_v4 = vld [vmem:[%s3847_s16 + $0x154] ss:$28 sps:$4 sm:$0xff]   ;;  %v3358_v5 = vld [vmem:[#allocation5 + $0x128] sm:$0xff]  }
  0x81   : > { %2705 = vmatprep.subr.bf16.mxu0 %v3273_v24  ;;  %v3320_v0 = vld [vmem:[%s3847_s16 + $0x124] ss:$28 sps:$4 sm:$0xff]   ;;  %v3327_v6 = vld [vmem:[%s3847_s16 + $0x15c] ss:$28 sps:$4 sm:$0xff]   ;;  %v3360_v7 = vld [vmem:[#allocation5 + $0x188] sm:$0xff]  }
  0x82   : > { %2816 = vmatpush3.bf16.msra.mxu1 %v3272_v23  ;;  %v3322_v3 = vld [vmem:[%s3847_s16 + $0x120] ss:$28 sps:$4 sm:$0xff]   ;;  %v3325_v8 = vld [vmem:[%s3847_s16 + $0x150] ss:$28 sps:$4 sm:$0xff]   ;;  %v3330_v11 = vld [vmem:[%s3847_s16 + $0x158] ss:$28 sps:$4 sm:$0xff]  }
  0x83   : > { %2817 = vmatprep.subr.bf16.mxu1 %v3275_v26  ;;  %v3331_v9 = vld [vmem:[%s3847_s16 + $0x18c] ss:$28 sps:$4 sm:$0xff]   ;;  %v3370_v10 = vld [vmem:[#allocation5 + $0x170] sm:$0xff]   ;;  %v3337_v16 = vld [vmem:[%s3847_s16 + $0x1c4] ss:$28 sps:$4 sm:$0xff]  }
  0x84   : > { %2706 = vmatpush3.bf16.msra.mxu0 %v3274_v25  ;;  %v3334_v12 = vld [vmem:[%s3847_s16 + $0x194] ss:$28 sps:$4 sm:$0xff]   ;;  %v3333_v15 = vld [vmem:[%s3847_s16 + $0x188] ss:$28 sps:$4 sm:$0xff]   ;;  %v3385_v17 = vld [vmem:[#allocation5 + $0x178] sm:$0xff]  }
  0x85   : > { %2707 = vmatprep.subr.bf16.mxu0 %v3277_v28  ;;  %v3373_v13 = vld [vmem:[#allocation5 + $0x130] sm:$0xff]   ;;  %v3386_v18 = vld [vmem:[#allocation5 + $0x198] sm:$0xff]   ;;  %v3341_v20 = vld [vmem:[%s3847_s16 + $0x1cc] ss:$28 sps:$4 sm:$0xff]  }
  0x86   : > { %2818 = vmatpush3.bf16.msra.mxu1 %v3276_v27  ;;  %v3375_v14 = vld [vmem:[#allocation5 + $0x190] sm:$0xff]   ;;  %v3389_v21 = vld [vmem:[#allocation5 + $0x138] sm:$0xff]   ;;  %v3391_v22 = vld [vmem:[#allocation5 + $0x1a0] sm:$0xff]  }
  0x87   : > { %2819 = vmatprep.subr.bf16.mxu1 %v3279_v30  ;;  %v3336_v19 = vld [vmem:[%s3847_s16 + $0x190] ss:$28 sps:$4 sm:$0xff]   ;;  %v3339_v23 = vld [vmem:[%s3847_s16 + $0x1c0] ss:$28 sps:$4 sm:$0xff]   ;;  %v3344_v27 = vld [vmem:[%s3847_s16 + $0x1c8] ss:$28 sps:$4 sm:$0xff]  }
  0x88   : > { %2708 = vmatpush3.bf16.msra.mxu0 %v3278_v29  ;;  %v3395_v24 = vld [vmem:[#allocation5 + $0x1a8] sm:$0xff]   ;;  %v3346_v25 = vld [vmem:[%s3847_s16 + $0x1fc] ss:$28 sps:$4 sm:$0xff]   ;;  %v3399_v26 = vld [vmem:[#allocation5 + $0x1b0] sm:$0xff]  }
  0x89   : > { %2917 = vmatprep.subr.bf16.mxu0 %v3284_v34  ;;  %v3349_v28 = vld [vmem:[%s3847_s16 + $0x204] ss:$28 sps:$4 sm:$0xff]   ;;  %v3403_v29 = vld [vmem:[#allocation5 + $0x1b8] sm:$0xff]   ;;  %v3354_v34 = vld [vmem:[%s3847_s16 + $0x230] ss:$28 sps:$4 sm:$0xff]  }
  0x8a   : > { %2820 = vmatpush3.bf16.msra.mxu1 %v3283_v33  ;;  %v3348_v30 = vld [vmem:[%s3847_s16 + $0x1f8] ss:$28 sps:$4 sm:$0xff]   ;;  %v3351_v32 = vld [vmem:[%s3847_s16 + $0x200] ss:$28 sps:$4 sm:$0xff]  }
  0x8b   : > { %1468 = vmatmul.mubr.bf16.vlgmr.msra.gmra.mrb[0].mxu0 %v3280_v31  ;;  %3077 = vmatprep.subr.bf16.mxu1 %v3345_v63  ;;  %v3352_v31 = vld [vmem:[%s3847_s16 + $0x234] ss:$28 sps:$4 sm:$0xff]   ;;  %v3356_v33 = vld [vmem:[%s3847_s16 + $0x23c] ss:$28 sps:$4 sm:$0xff]  }
  0x8c   : > { %2918 = vmatpush3.bf16.msra.mxu0 %v3288_v37  ;;  %1475 = vmatprep.mubr.bf16.mxu0 %v3289_v38  ;;  %v3359_v36 = vld [vmem:[%s3847_s16 + $0x238] ss:$28 sps:$4 sm:$0xff]   ;;  %v3363_v38 = vld [vmem:[%s3847_s16 + $0x268] ss:$28 sps:$4 sm:$0xff]  }
  0x8d   : > { %1629 = vmatmul.mubr.bf16.vlgmr.msra.gmra.mrb[0].mxu1 %v3285_v35  ;;  %2919 = vmatprep.subr.bf16.mxu0 %v3298_v42  ;;  %v3361_v35 = vld [vmem:[%s3847_s16 + $0x26c] ss:$28 sps:$4 sm:$0xff]   ;;  %v3364_v37 = vld [vmem:[%s3847_s16 + $0x274] ss:$28 sps:$4 sm:$0xff]   ;;  %v3369_v42 = vld [vmem:[%s3847_s16 + $0x2a0] ss:$28 sps:$4 sm:$0xff]  }
  0x8e   : > { %1636 = vmatprep.mubr.bf16.mxu1 %v3292_v39  ;;  %3078 = vmatpush3.bf16.msra.mxu1 %v3345_v63  ;;  %v3367_v39 = vld [vmem:[%s3847_s16 + $0x2a4] ss:$28 sps:$4 sm:$0xff]  }
  0x8f   : > { %3079 = vmatprep.subr.bf16.mxu1 %v3360_v7  ;;  %v3409_v63 = vld [vmem:[%s3847_s16 + $0x84] ss:$28 sps:$4 sm:$0xff]  }
  0x90   : > { %2920 = vmatpush3.bf16.msra.mxu0 %v3301_v45  ;;  %v3379_v45 = vld [vmem:[%s3847_s16 + $0x2e4] ss:$28 sps:$4 sm:$0xff]  }
  0x91   : > { %2921 = vmatprep.subr.bf16.mxu0 %v3312_v48  ;;  %v3381_v48 = vld [vmem:[%s3847_s16 + $0x2e0] ss:$28 sps:$4 sm:$0xff]  }
  0x92   : > { %3080 = vmatpush3.bf16.msra.mxu1 %v3360_v7  ;;  %v3417_v7 = vld [vmem:[%s3847_s16 + $0xf4] ss:$28 sps:$4 sm:$0xff]  }
  0x93   : > { %1476 = vmatmul.mubr.bf16.gmra.mrb[4].mxu0 %v3291_v40  ;;  %3081 = vmatprep.subr.bf16.mxu1 %v3375_v14  ;;  %v3366_v40 = vld [vmem:[%s3847_s16 + $0x270] ss:$28 sps:$4 sm:$0xff]  }
  0x94   : > { %1483 = vmatprep.mubr.bf16.mxu0 %v3295_v41  ;;  %2922 = vmatpush3.bf16.msra.mxu0 %v3315_v50  ;;  %v3371_v41 = vld [vmem:[%s3847_s16 + $0x2ac] ss:$28 sps:$4 sm:$0xff]  }
  0x95   : > { %1637 = vmatmul.mubr.bf16.gmra.mrb[4].mxu1 %v3294_v43  ;;  %2923 = vmatprep.subr.bf16.mxu0 %v3326_v54  ;;  %v3376_v43 = vld [vmem:[%s3847_s16 + $0x2dc] ss:$28 sps:$4 sm:$0xff]   ;;  %v3384_v50 = vld [vmem:[%s3847_s16 + $0x310] ss:$28 sps:$4 sm:$0xff]   ;;  %v3394_v54 = vld [vmem:[%s3847_s16 + $0x348] ss:$28 sps:$4 sm:$0xff]  }
  0x96   : > { %1644 = vmatprep.mubr.bf16.mxu1 %v3299_v44  ;;  %3082 = vmatpush3.bf16.msra.mxu1 %v3375_v14  ;;  %v3374_v44 = vld [vmem:[%s3847_s16 + $0x2a8] ss:$28 sps:$4 sm:$0xff]  }
  0x97   : > { %3083 = vmatprep.subr.bf16.mxu1 %v3386_v18  ;;  %v3424_v14 = vld [vmem:[%s3847_s16 + $0x128] ss:$28 sps:$4 sm:$0xff]  }
  0x98   : > { %2924 = vmatpush3.bf16.msra.mxu0 %v3329_v56  ;;  %v3398_v56 = vld [vmem:[%s3847_s16 + $0x350] ss:$28 sps:$4 sm:$0xff]  }
  0x99   : > { %2925 = vmatprep.subr.bf16.mxu0 %v3340_v59  ;;  %v3406_v59 = vld [vmem:[%s3847_s16 + $0x4c] ss:$28 sps:$4 sm:$0xff]  }
  0x9a   : > { %3084 = vmatpush3.bf16.msra.mxu1 %v3386_v18  ;;  %v3427_v18 = vld [vmem:[%s3847_s16 + $0x160] ss:$28 sps:$4 sm:$0xff]  }
  0x9b   : > { %1484 = vmatmul.mubr.bf16.gmra.mrb[8].mxu0 %v3297_v46  ;;  %3085 = vmatprep.subr.bf16.mxu1 %v3391_v22  ;;  %v3378_v46 = vld [vmem:[%s3847_s16 + $0x2d8] ss:$28 sps:$4 sm:$0xff]  }
  0x9c   : > { %1491 = vmatprep.mubr.bf16.mxu0 %v3303_v47  ;;  %2926 = vmatpush3.bf16.msra.mxu0 %v3343_v62  ;;  %v3382_v47 = vld [vmem:[%s3847_s16 + $0x314] ss:$28 sps:$4 sm:$0xff]   ;;  %v3408_v62 = vld [vmem:[%s3847_s16 + $0x48] ss:$28 sps:$4 sm:$0xff]  }
  0x9d   : > { %1645 = vmatmul.mubr.bf16.gmra.mrb[8].mxu1 %v3302_v49  ;;  %2927 = vmatprep.subr.bf16.mxu0 %v3355_v2  ;;  %v3387_v49 = vld [vmem:[%s3847_s16 + $0x31c] ss:$28 sps:$4 sm:$0xff]  }
  0x9e   : > { %1652 = vmatprep.mubr.bf16.mxu1 %v3306_v51  ;;  %3086 = vmatpush3.bf16.msra.mxu1 %v3391_v22  ;;  %v3392_v51 = vld [vmem:[%s3847_s16 + $0x34c] ss:$28 sps:$4 sm:$0xff]   ;;  %v3411_v2 = vld [vmem:[%s3847_s16 + $0x80] ss:$28 sps:$4 sm:$0xff]   ;;  %v3432_v22 = vld [vmem:[%s3847_s16 + $0x198] ss:$28 sps:$4 sm:$0xff]  }
  0x9f   : > { %3087 = vmatprep.subr.bf16.mxu1 %v3395_v24 }
  0xa0   : > { %2928 = vmatpush3.bf16.msra.mxu0 %v3358_v5  ;;  %v3428_v5 = vld [vmem:[%s3847_s16 + $0x168] ss:$28 sps:$4 sm:$0xff]  }
  0xa1   : > { %2929 = vmatprep.subr.bf16.mxu0 %v3370_v10  ;;  %v3419_v10 = vld [vmem:[%s3847_s16 + $0xf0] ss:$28 sps:$4 sm:$0xff]  }
  0xa2   : > { %3088 = vmatpush3.bf16.msra.mxu1 %v3395_v24  ;;  %v3461_v24 = vld [vmem:[%s3847_s16 + $0x360] ss:$28 sps:$4 sm:$0xff]  }
  0xa3   : > { %1492 = vmatmul.mubr.bf16.gmra.mrb[12].mxu0 %v3305_v52  ;;  %3089 = vmatprep.subr.bf16.mxu1 %v3399_v26  ;;  %v3390_v52 = vld [vmem:[%s3847_s16 + $0x318] ss:$28 sps:$4 sm:$0xff]  }
  0xa4   : > { %1499 = vmatprep.mubr.bf16.mxu0 %v3309_v53  ;;  %2930 = vmatpush3.bf16.msra.mxu0 %v3373_v13  ;;  %v3396_v53 = vld [vmem:[%s3847_s16 + $0x354] ss:$28 sps:$4 sm:$0xff]   ;;  %v3444_v13 = vld [vmem:[%s3847_s16 + $0x248] ss:$28 sps:$4 sm:$0xff]  }
  0xa5   : > { %1653 = vmatmul.mubr.bf16.gmra.mrb[12].mxu1 %v3308_v55  ;;  %2931 = vmatprep.subr.bf16.mxu0 %v3385_v17  ;;  %v3402_v55 = vld [vmem:[%s3847_s16 + $0x14] ss:$28 sps:$4 sm:$0xff]  }
  0xa6   : > { %1660 = vmatprep.mubr.bf16.mxu1 %v3313_v57  ;;  %3090 = vmatpush3.bf16.msra.mxu1 %v3399_v26  ;;  %v3404_v57 = vld [vmem:[%s3847_s16 + $0x18] ss:$28 sps:$4 sm:$0xff]   ;;  %v3438_v26 = vld [vmem:[%s3847_s16 + $0x20c] ss:$28 sps:$4 sm:$0xff]  }
  0xa7   : > { %3091 = vmatprep.subr.bf16.mxu1 %v3403_v29  ;;  %v3452_v17 = vld [vmem:[%s3847_s16 + $0x2b8] ss:$28 sps:$4 sm:$0xff]  }
  0xa8   : > { %2932 = vmatpush3.bf16.msra.mxu0 %v3389_v21  ;;  %v3460_v21 = vld [vmem:[%s3847_s16 + $0x328] ss:$28 sps:$4 sm:$0xff]  }
  0xaa   : > { %3092 = vmatpush3.bf16.msra.mxu1 %v3403_v29  ;;  %v3465_v29 = vld [vmem:[#allocation7] sm:$0xff]  }
  0xab   : > { %1500 = vmatmul.mubr.bf16.gmra.mrb[16].mxu0 %v3311_v58  ;;  %v3400_v58 = vld [vmem:[%s3847_s16 + $0x10] ss:$28 sps:$4 sm:$0xff]   ;;  %3125 = vmatprep.subr.bf16.mxu1 %v3465_v29 }
  0xac   : > { %1507 = vmatprep.mubr.bf16.mxu0 %v3317_v60  ;;  %v3405_v60 = vld [vmem:[%s3847_s16 + $0x50] ss:$28 sps:$4 sm:$0xff]  }
  0xad   : > { %1661 = vmatmul.mubr.bf16.gmra.mrb[16].mxu1 %v3316_v61  ;;  %v3412_v61 = vld [vmem:[%s3847_s16 + $0x88] ss:$28 sps:$4 sm:$0xff]  }
  0xae   : > { %1668 = vmatprep.mubr.bf16.mxu1 %v3320_v0  ;;  %v3413_v0 = vld [vmem:[%s3847_s16 + $0xc0] ss:$28 sps:$4 sm:$0xff]  }
  0xb3   : > { %1508 = vmatmul.mubr.bf16.gmra.mrb[20].mxu0 %v3319_v1  ;;  %v3420_v1 = vld [vmem:[%s3847_s16 + $0xf8] ss:$28 sps:$4 sm:$0xff]  }
  0xb4   : > { %1515 = vmatprep.mubr.bf16.mxu0 %v3323_v4  ;;  %v3421_v4 = vld [vmem:[%s3847_s16 + $0x130] ss:$28 sps:$4 sm:$0xff]  }
  0xb5   : > { %1669 = vmatmul.mubr.bf16.gmra.mrb[20].mxu1 %v3322_v3  ;;  %v3414_v3 = vld [vmem:[%s3847_s16 + $0xbc] ss:$28 sps:$4 sm:$0xff]  }
  0xb6   : > { %1676 = vmatprep.mubr.bf16.mxu1 %v3327_v6  ;;  %v3416_v6 = vld [vmem:[%s3847_s16 + $0xb8] ss:$28 sps:$4 sm:$0xff]  }
  0xbb   : > { %1516 = vmatmul.mubr.bf16.gmra.mrb[24].mxu0 %v3325_v8  ;;  %v3429_v8 = vld [vmem:[%s3847_s16 + $0x1a0] ss:$28 sps:$4 sm:$0xff]  }
  0xbc   : > { %1523 = vmatprep.mubr.bf16.mxu0 %v3331_v9  ;;  %v3436_v9 = vld [vmem:[%s3847_s16 + $0x1d8] ss:$28 sps:$4 sm:$0xff]  }
  0xbd   : > { %1677 = vmatmul.mubr.bf16.gmra.mrb[24].mxu1 %v3330_v11  ;;  %v3422_v11 = vld [vmem:[%s3847_s16 + $0x12c] ss:$28 sps:$4 sm:$0xff]  }
  0xbe   : > { %1684 = vmatprep.mubr.bf16.mxu1 %v3334_v12  ;;  %v3437_v12 = vld [vmem:[%s3847_s16 + $0x210] ss:$28 sps:$4 sm:$0xff]  }
  0xc3   : > { %1524 = vmatmul.mubr.bf16.gmra.mrb[28].mxu0 %v3333_v15  ;;  %v3425_v15 = vld [vmem:[%s3847_s16 + $0x164] ss:$28 sps:$4 sm:$0xff]  }
  0xc4   : > { %1531 = vmatprep.mubr.bf16.mxu0 %v3337_v16  ;;  %v3445_v16 = vld [vmem:[%s3847_s16 + $0x280] ss:$28 sps:$4 sm:$0xff]  }
  0xc5   : > { %1685 = vmatmul.mubr.bf16.gmra.mrb[28].mxu1 %v3336_v19  ;;  %v3430_v19 = vld [vmem:[%s3847_s16 + $0x19c] ss:$28 sps:$4 sm:$0xff]  }
  0xc6   : > { %1692 = vmatprep.mubr.bf16.mxu1 %v3341_v20  ;;  %v3453_v20 = vld [vmem:[%s3847_s16 + $0x2f0] ss:$28 sps:$4 sm:$0xff]  }
  0xcb   : > { %1532 = vmatmul.mubr.bf16.gmra.mrb[32].mxu0 %v3339_v23  ;;  %v3433_v23 = vld [vmem:[%s3847_s16 + $0x1d4] ss:$28 sps:$4 sm:$0xff]  }
  0xcc   : > { %1539 = vmatprep.mubr.bf16.mxu0 %v3346_v25  ;;  %v3435_v25 = vld [vmem:[%s3847_s16 + $0x1d0] ss:$28 sps:$4 sm:$0xff]  }
  0xcd   : > { %1693 = vmatmul.mubr.bf16.gmra.mrb[32].mxu1 %v3344_v27  ;;  %v3440_v27 = vld [vmem:[%s3847_s16 + $0x208] ss:$28 sps:$4 sm:$0xff]  }
  0xce   : > { %1700 = vmatprep.mubr.bf16.mxu1 %v3349_v28  ;;  %v3441_v28 = vld [vmem:[%s3847_s16 + $0x244] ss:$28 sps:$4 sm:$0xff]  }
  0xd3   : > { %1540 = vmatmul.mubr.bf16.gmra.mrb[36].mxu0 %v3348_v30  ;;  %v3443_v30 = vld [vmem:[%s3847_s16 + $0x240] ss:$28 sps:$4 sm:$0xff]  }
  0xd4   : > { %1547 = vmatprep.mubr.bf16.mxu0 %v3352_v31  ;;  %v3466_v31 = vld [vmem:[#allocation7 + $0x8] sm:$0xff]  }
  0xd5   : > { %1701 = vmatmul.mubr.bf16.gmra.mrb[36].mxu1 %v3351_v32  ;;  %v3446_v32 = vld [vmem:[%s3847_s16 + $0x27c] ss:$28 sps:$4 sm:$0xff]  }
  0xd6   : > { %1708 = vmatprep.mubr.bf16.mxu1 %v3356_v33  ;;  %v3467_v33 = vld [vmem:[#allocation7 + $0x10] sm:$0xff]  }
  0xdb   : > { %1548 = vmatmul.mubr.bf16.gmra.mrb[40].mxu0 %v3354_v34 }
  0xdc   : > { %1555 = vmatprep.mubr.bf16.mxu0 %v3361_v35  ;;  %v3963_v35 = vld [vmem:[%s4281_s2] ss:$0 sm:$0xff] }
  0xdd   : > { %1709 = vmatmul.mubr.bf16.gmra.mrb[40].mxu1 %v3359_v36 }
  0xde   : > { %1716 = vmatprep.mubr.bf16.mxu1 %v3364_v37  ;;  %v3448_v37 = vld [vmem:[%s3847_s16 + $0x278] ss:$28 sps:$4 sm:$0xff]  }
  0xe3   : > { %1556 = vmatmul.mubr.bf16.gmra.mrb[44].mxu0 %v3363_v38  ;;  %v3468_v38 = vld [vmem:[#allocation7 + $0x18] sm:$0xff]  }
  0xe4   : > { %1563 = vmatprep.mubr.bf16.mxu0 %v3367_v39 }
  0xe5   : > { %1717 = vmatmul.mubr.bf16.gmra.mrb[44].mxu1 %v3366_v40 }
  0xe6   : > { %1724 = vmatprep.mubr.bf16.mxu1 %v3371_v41  ;;  %v3449_v41 = vld [vmem:[%s3847_s16 + $0x2b4] ss:$28 sps:$4 sm:$0xff]  }
  0xeb   : > { %1564 = vmatmul.mubr.bf16.gmra.mrb[48].mxu0 %v3369_v42 }
  0xec   : > { %1571 = vmatprep.mubr.bf16.mxu0 %v3376_v43 }
  0xed   : > { %1725 = vmatmul.mubr.bf16.gmra.mrb[48].mxu1 %v3374_v44 }
  0xee   : > { %1732 = vmatprep.mubr.bf16.mxu1 %v3379_v45 }
  0xf3   : > { %1572 = vmatmul.mubr.bf16.gmra.mrb[52].mxu0 %v3378_v46 }
  0xf4   : > { %1579 = vmatprep.mubr.bf16.mxu0 %v3382_v47 }
  0xf5   : > { %1733 = vmatmul.mubr.bf16.gmra.mrb[52].mxu1 %v3381_v48 }
  0xf6   : > { %1740 = vmatprep.mubr.bf16.mxu1 %v3387_v49  ;;  %v3469_v49 = vld [vmem:[#allocation7 + $0x20] sm:$0xff]  }
  0xfb   : > { %1580 = vmatmul.mubr.bf16.gmra.mrb[56].mxu0 %v3384_v50 }
  0xfc   : > { %1587 = vmatprep.mubr.bf16.mxu0 %v3392_v51 }
  0xfd   : > { %1741 = vmatmul.mubr.bf16.gmra.mrb[56].mxu1 %v3390_v52 }
  0xfe   : > { %1748 = vmatprep.mubr.bf16.mxu1 %v3396_v53 }
 0x103   : > { %1588 = vmatmul.mubr.bf16.gmra.mrb[60].mxu0 %v3394_v54 }
 0x104   : > { %1789 = vmatprep.mubr.bf16.mxu0 %v3402_v55 }
 0x105   : > { %1749 = vmatmul.mubr.bf16.gmra.mrb[60].mxu1 %v3398_v56 }
 0x106   : > { %3093 = vmatprep.mubr.bf16.mxu1 %v3404_v57  ;;  %v3451_v57 = vld [vmem:[%s3847_s16 + $0x2b0] ss:$28 sps:$4 sm:$0xff]  }
 0x10b   : > { %1790 = vmatmul.mubr.bf16.vlgmr.msra.gmra.mrb[64].mxu0 %v3400_v58  ;;  %v3470_v58 = vld [vmem:[#allocation7 + $0x28] sm:$0xff]  }
 0x10c   : > { %1797 = vmatprep.mubr.bf16.mxu0 %v3406_v59 }
 0x10d   : > { %3094 = vmatmul.mubr.bf16.vlgmr.msra.gmra.mrb[64].mxu1 %v3405_v60 }
 0x10e   : > { %3097 = vmatprep.mubr.bf16.mxu1 %v3412_v61  ;;  %3126 = vmatpush3.bf16.msra.mxu1 %v3465_v29  ;;  %v3454_v61 = vld [vmem:[%s3847_s16 + $0x2ec] ss:$28 sps:$4 sm:$0xff]  }
 0x10f   : > { %3127 = vmatprep.subr.bf16.mxu1 %v3466_v31 }
 0x112   : > { %3128 = vmatpush3.bf16.msra.mxu1 %v3466_v31 }
 0x113   : > { %1798 = vmatmul.mubr.bf16.gmra.mrb[68].mxu0 %v3408_v62  ;;  %3129 = vmatprep.subr.bf16.mxu1 %v3467_v33 }
 0x114   : > { %1805 = vmatprep.mubr.bf16.mxu0 %v3409_v63 }
 0x115   : > { %3098 = vmatmul.mubr.bf16.gmra.mrb[68].mxu1 %v3413_v0 }
 0x116   : > { %3101 = vmatprep.mubr.bf16.mxu1 %v3420_v1  ;;  %3130 = vmatpush3.bf16.msra.mxu1 %v3467_v33 }
 0x117   : > { %3131 = vmatprep.subr.bf16.mxu1 %v3468_v38 }
 0x11a   : > { %3132 = vmatpush3.bf16.msra.mxu1 %v3468_v38 }
 0x11b   : > { %1806 = vmatmul.mubr.bf16.gmra.mrb[72].mxu0 %v3411_v2  ;;  %3133 = vmatprep.subr.bf16.mxu1 %v3469_v49 }
 0x11c   : > { %1813 = vmatprep.mubr.bf16.mxu0 %v3414_v3 }
 0x11d   : > { %3102 = vmatmul.mubr.bf16.gmra.mrb[72].mxu1 %v3421_v4 }
 0x11e   : > { %3105 = vmatprep.mubr.bf16.mxu1 %v3428_v5  ;;  %3134 = vmatpush3.bf16.msra.mxu1 %v3469_v49  ;;  %v3471_v5 = vld [vmem:[#allocation7 + $0x30] sm:$0xff]  }
 0x11f   : > { %3135 = vmatprep.subr.bf16.mxu1 %v3470_v58 }
 0x122   : > { %3136 = vmatpush3.bf16.msra.mxu1 %v3470_v58 }
 0x123   : > { %1814 = vmatmul.mubr.bf16.gmra.mrb[76].mxu0 %v3416_v6  ;;  %3137 = vmatprep.subr.bf16.mxu1 %v3471_v5 }
 0x124   : > { %1821 = vmatprep.mubr.bf16.mxu0 %v3417_v7 }
 0x125   : > { %3106 = vmatmul.mubr.bf16.gmra.mrb[76].mxu1 %v3429_v8 }
 0x126   : > { %3109 = vmatprep.mubr.bf16.mxu1 %v3436_v9  ;;  %3138 = vmatpush3.bf16.msra.mxu1 %v3471_v5 }
 0x12b   : > { %1822 = vmatmul.mubr.bf16.gmra.mrb[80].mxu0 %v3419_v10 }
 0x12c   : > { %1829 = vmatprep.mubr.bf16.mxu0 %v3422_v11 }
 0x12d   : > { %3110 = vmatmul.mubr.bf16.gmra.mrb[80].mxu1 %v3437_v12 }
 0x12e   : > { %3113 = vmatprep.mubr.bf16.mxu1 %v3444_v13  ;;  %v3456_v13 = vld [vmem:[%s3847_s16 + $0x2e8] ss:$28 sps:$4 sm:$0xff]  }
 0x133   : > { %1830 = vmatmul.mubr.bf16.gmra.mrb[84].mxu0 %v3424_v14  ;;  %v3472_v14 = vld [vmem:[#allocation7 + $0x38] sm:$0xff]  }
 0x134   : > { %1837 = vmatprep.mubr.bf16.mxu0 %v3425_v15  ;;  %3139 = vmatprep.subr.bf16.mxu1 %v3472_v14 }
 0x135   : > { %3114 = vmatmul.mubr.bf16.gmra.mrb[84].mxu1 %v3445_v16 }
 0x136   : > { %3117 = vmatprep.mubr.bf16.mxu1 %v3452_v17  ;;  %v3457_v17 = vld [vmem:[%s3847_s16 + $0x324] ss:$28 sps:$4 sm:$0xff]   ;;  %3140 = vmatpush3.bf16.msra.mxu1 %v3472_v14 }
 0x13b   : > { %1838 = vmatmul.mubr.bf16.gmra.mrb[88].mxu0 %v3427_v18 }
 0x13c   : > { %1845 = vmatprep.mubr.bf16.mxu0 %v3430_v19 }
 0x13d   : > { %3118 = vmatmul.mubr.bf16.gmra.mrb[88].mxu1 %v3453_v20 }
 0x13e   : > { %3121 = vmatprep.mubr.bf16.mxu1 %v3460_v21 }
 0x143   : > { %1846 = vmatmul.mubr.bf16.gmra.mrb[92].mxu0 %v3432_v22 }
 0x144   : > { %1853 = vmatprep.mubr.bf16.mxu0 %v3433_v23 }
 0x145   : > { %3122 = vmatmul.mubr.bf16.gmra.mrb[92].mxu1 %v3461_v24 }
 0x14b   : > { %1854 = vmatmul.mubr.bf16.gmra.mrb[96].mxu0 %v3435_v25 }
 0x14c   : > { %1861 = vmatprep.mubr.bf16.mxu0 %v3438_v26 }
 0x153   : > { %1862 = vmatmul.mubr.bf16.gmra.mrb[100].mxu0 %v3440_v27 }
 0x154   : > { %1869 = vmatprep.mubr.bf16.mxu0 %v3441_v28 }
 0x15b   : > { %1870 = vmatmul.mubr.bf16.gmra.mrb[104].mxu0 %v3443_v30 }
 0x15c   : > { %1877 = vmatprep.mubr.bf16.mxu0 %v3446_v32  ;;  %v3459_v32 = vld [vmem:[%s3847_s16 + $0x320] ss:$28 sps:$4 sm:$0xff]  }
 0x15e   : > { %v2709_v34 = vpop.f32.mrb[0].mxu0 }
 0x15f   : > { %v2710_v36 = vpop.f32.mrb[1].mxu0 }
 0x160   : > { %v2711_v39 = vadd.f32 %v2710_v36, %v2709_v34  ;;  %v2712_v40 = vpop.f32.mrb[2].mxu0  ;;  %v2821_v42 = vpop.f32.mrb[0].mxu1  ;;  %v3462_v36 = vld [vmem:[%s3847_s16 + $0x35c] ss:$28 sps:$4 sm:$0xff]  }
 0x161   : > { %v2713_v43 = vpop.f32.mrb[3].mxu0  ;;  %v2822_v46 = vpop.f32.mrb[1].mxu1 }
 0x162   : > { %v1470_v44 = vadd.f32 %v2711_v39, %v3963_v35  ;;  %v2714_v45 = vadd.f32 %v2713_v43, %v2712_v40  ;;  %v2823_v47 = vadd.f32 %v2822_v46, %v2821_v42  ;;  %v2824_v48 = vpop.f32.mrb[2].mxu1 }
 0x163   : > { %1878 = vmatmul.mubr.bf16.gmra.mrb[108].mxu0 %v3448_v37  ;;  %v2825_v51 = vpop.f32.mrb[3].mxu1 }
 0x164   : > { %v1473_v50 = vadd.f32 %v2714_v45, %v3963_v35  ;;  %1885 = vmatprep.mubr.bf16.mxu0 %v3449_v41  ;;  %v3969_v52 = vadd.f32 %v2823_v47, %v1470_v44  ;;  %v2826_v53 = vadd.f32 %v2825_v51, %v2824_v48  ;;  %v3464_v51 = vld [vmem:[%s3847_s16 + $0x358] ss:$28 sps:$4 sm:$0xff]   ;;  %s3565_s16 = scalar_lea.vmem %s3564_s6, 8192 }
 0x165   : > { %p3567_p9 = scmp.lt.s32.totalorder %s3565_s16, %s3559_s13 }
 0x166   : > { %v2715_v54 = vpop.f32.mrb[4].mxu0  ;;  %v3971_v55 = vadd.f32 %v2826_v53, %v1473_v50 }
 0x167   : > { %v2716_v56 = vpop.f32.mrb[5].mxu0  ;;  %p3568_p12 = por %p3567_p9, %p3566_p7 }
 0x168   : > { %v2717_v59 = vadd.f32 %v2716_v56, %v2715_v54  ;;  %v2718_v60 = vpop.f32.mrb[6].mxu0  ;;  %v2827_v62 = vpop.f32.mrb[4].mxu1 }
 0x169   : > { %v2719_v63 = vpop.f32.mrb[7].mxu0  ;;  %v2828_v2 = vpop.f32.mrb[5].mxu1  ;;  %p3569_p2 = pnand %p3568_p12, %p3562_p3 }
 0x16a   : > { %v1478_v0 = vadd.f32 %v2717_v59, %v3963_v35  ;;  %v2720_v1 = vadd.f32 %v2719_v63, %v2718_v60  ;;  %v2829_v3 = vadd.f32 %v2828_v2, %v2827_v62  ;;  %v2830_v4 = vpop.f32.mrb[6].mxu1 }
 0x16b   : > { %1886 = vmatmul.mubr.bf16.gmra.mrb[112].mxu0 %v3451_v57  ;;  %v2831_v7 = vpop.f32.mrb[7].mxu1 }
 0x16c   : > { %v1481_v6 = vadd.f32 %v2720_v1, %v3963_v35  ;;  %1893 = vmatprep.mubr.bf16.mxu0 %v3454_v61  ;;  %v3977_v8 = vadd.f32 %v2829_v3, %v1478_v0  ;;  %v2832_v9 = vadd.f32 %v2831_v7, %v2830_v4 }
 0x16e   : > { %v2721_v10 = vpop.f32.mrb[8].mxu0  ;;  %v3979_v11 = vadd.f32 %v2832_v9, %v1481_v6 }
 0x16f   : > { %v2722_v12 = vpop.f32.mrb[9].mxu0 }
 0x170   : > { %v2723_v15 = vadd.f32 %v2722_v12, %v2721_v10  ;;  %v2724_v16 = vpop.f32.mrb[10].mxu0  ;;  %v2833_v18 = vpop.f32.mrb[8].mxu1 }
 0x171   : > { %v2725_v19 = vpop.f32.mrb[11].mxu0  ;;  %v2834_v22 = vpop.f32.mrb[9].mxu1 }
 0x172   : > { %v1486_v20 = vadd.f32 %v2723_v15, %v3963_v35  ;;  %v2726_v21 = vadd.f32 %v2725_v19, %v2724_v16  ;;  %v2835_v23 = vadd.f32 %v2834_v22, %v2833_v18  ;;  %v2836_v24 = vpop.f32.mrb[10].mxu1 }
 0x173   : > { %1894 = vmatmul.mubr.bf16.gmra.mrb[116].mxu0 %v3456_v13  ;;  %v2837_v26 = vpop.f32.mrb[11].mxu1 }
 0x174   : > { %v1489_v25 = vadd.f32 %v2726_v21, %v3963_v35  ;;  %1901 = vmatprep.mubr.bf16.mxu0 %v3457_v17  ;;  %v3985_v27 = vadd.f32 %v2835_v23, %v1486_v20  ;;  %v2838_v28 = vadd.f32 %v2837_v26, %v2836_v24 }
 0x176   : > { %v2727_v29 = vpop.f32.mrb[12].mxu0  ;;  %v3987_v30 = vadd.f32 %v2838_v28, %v1489_v25 }
 0x177   : > { %v2728_v31 = vpop.f32.mrb[13].mxu0 }
 0x178   : > { %v2729_v33 = vadd.f32 %v2728_v31, %v2727_v29  ;;  %v2730_v34 = vpop.f32.mrb[14].mxu0  ;;  %v2839_v37 = vpop.f32.mrb[12].mxu1 }
 0x179   : > { %v2731_v38 = vpop.f32.mrb[15].mxu0  ;;  %v2840_v41 = vpop.f32.mrb[13].mxu1 }
 0x17a   : > { %v1494_v39 = vadd.f32 %v2729_v33, %v3963_v35  ;;  %v2732_v40 = vadd.f32 %v2731_v38, %v2730_v34  ;;  %v2841_v42 = vadd.f32 %v2840_v41, %v2839_v37  ;;  %v2842_v43 = vpop.f32.mrb[14].mxu1 }
 0x17b   : > { %1902 = vmatmul.mubr.bf16.gmra.mrb[120].mxu0 %v3459_v32  ;;  %v2843_v45 = vpop.f32.mrb[15].mxu1 }
 0x17c   : > { %v1497_v44 = vadd.f32 %v2732_v40, %v3963_v35  ;;  %1909 = vmatprep.mubr.bf16.mxu0 %v3462_v36  ;;  %v3993_v46 = vadd.f32 %v2841_v42, %v1494_v39  ;;  %v2844_v47 = vadd.f32 %v2843_v45, %v2842_v43 }
 0x17e   : > { %v2733_v48 = vpop.f32.mrb[16].mxu0  ;;  %v3995_v49 = vadd.f32 %v2844_v47, %v1497_v44 }
 0x17f   : > { %v2734_v50 = vpop.f32.mrb[17].mxu0 }
 0x180   : > { %v2735_v53 = vadd.f32 %v2734_v50, %v2733_v48  ;;  %v2736_v54 = vpop.f32.mrb[18].mxu0  ;;  %v2845_v56 = vpop.f32.mrb[16].mxu1 }
 0x181   : > { %v2737_v57 = vpop.f32.mrb[19].mxu0  ;;  %v2846_v60 = vpop.f32.mrb[17].mxu1 }
 0x182   : > { %v1502_v58 = vadd.f32 %v2735_v53, %v3963_v35  ;;  %v2738_v59 = vadd.f32 %v2737_v57, %v2736_v54  ;;  %v2847_v61 = vadd.f32 %v2846_v60, %v2845_v56  ;;  %v2848_v62 = vpop.f32.mrb[18].mxu1 }
 0x183   : > { %1910 = vmatmul.mubr.bf16.gmra.mrb[124].mxu0 %v3464_v51  ;;  %v2849_v0 = vpop.f32.mrb[19].mxu1 }
 0x184   : > { %v1505_v63 = vadd.f32 %v2738_v59, %v3963_v35  ;;  %v4000_v1 = vadd.f32 %v2847_v61, %v1502_v58  ;;  %v2850_v2 = vadd.f32 %v2849_v0, %v2848_v62 }
 0x186   : > { %v2739_v3 = vpop.f32.mrb[20].mxu0  ;;  %v4002_v4 = vadd.f32 %v2850_v2, %v1505_v63 }
 0x187   : > { %v2740_v5 = vpop.f32.mrb[21].mxu0 }
 0x188   : > { %v2741_v6 = vadd.f32 %v2740_v5, %v2739_v3  ;;  %v2742_v7 = vpop.f32.mrb[22].mxu0  ;;  %v2851_v9 = vpop.f32.mrb[20].mxu1 }
 0x189   : > { %v2743_v10 = vpop.f32.mrb[23].mxu0  ;;  %v2852_v14 = vpop.f32.mrb[21].mxu1 }
 0x18a   : > { %v1510_v12 = vadd.f32 %v2741_v6, %v3963_v35  ;;  %v2744_v13 = vadd.f32 %v2743_v10, %v2742_v7  ;;  %v2853_v15 = vadd.f32 %v2852_v14, %v2851_v9  ;;  %v2854_v16 = vpop.f32.mrb[22].mxu1 }
 0x18b   : > { %v2855_v18 = vpop.f32.mrb[23].mxu1 }
 0x18c   : > { %v1513_v17 = vadd.f32 %v2744_v13, %v3963_v35  ;;  %v4006_v19 = vadd.f32 %v2853_v15, %v1510_v12  ;;  %v2856_v20 = vadd.f32 %v2855_v18, %v2854_v16 }
 0x18e   : > { %v2745_v21 = vpop.f32.mrb[24].mxu0  ;;  %v4008_v22 = vadd.f32 %v2856_v20, %v1513_v17 }
 0x18f   : > { %v2746_v23 = vpop.f32.mrb[25].mxu0 }
 0x190   : > { %v2747_v24 = vadd.f32 %v2746_v23, %v2745_v21  ;;  %v2748_v25 = vpop.f32.mrb[26].mxu0  ;;  %v2857_v26 = vpop.f32.mrb[24].mxu1 }
 0x191   : > { %v2749_v28 = vpop.f32.mrb[27].mxu0  ;;  %v2858_v32 = vpop.f32.mrb[25].mxu1 }
 0x192   : > { %v1518_v29 = vadd.f32 %v2747_v24, %v3963_v35  ;;  %v2750_v31 = vadd.f32 %v2749_v28, %v2748_v25  ;;  %v2859_v33 = vadd.f32 %v2858_v32, %v2857_v26  ;;  %v2860_v34 = vpop.f32.mrb[26].mxu1 }
 0x193   : > { %v2861_v37 = vpop.f32.mrb[27].mxu1 }
 0x194   : > { %v1521_v36 = vadd.f32 %v2750_v31, %v3963_v35  ;;  %v4012_v38 = vadd.f32 %v2859_v33, %v1518_v29  ;;  %v2862_v39 = vadd.f32 %v2861_v37, %v2860_v34 }
 0x196   : > { %v2751_v40 = vpop.f32.mrb[28].mxu0  ;;  %v4014_v41 = vadd.f32 %v2862_v39, %v1521_v36 }
 0x197   : > { %v2752_v42 = vpop.f32.mrb[29].mxu0 }
 0x198   : > { %v2753_v43 = vadd.f32 %v2752_v42, %v2751_v40  ;;  %v2754_v44 = vpop.f32.mrb[30].mxu0  ;;  %v2863_v45 = vpop.f32.mrb[28].mxu1 }
 0x199   : > { %v2755_v47 = vpop.f32.mrb[31].mxu0  ;;  %v2864_v51 = vpop.f32.mrb[29].mxu1 }
 0x19a   : > { %v1526_v48 = vadd.f32 %v2753_v43, %v3963_v35  ;;  %v2756_v50 = vadd.f32 %v2755_v47, %v2754_v44  ;;  %v2865_v53 = vadd.f32 %v2864_v51, %v2863_v45  ;;  %v2866_v54 = vpop.f32.mrb[30].mxu1 }
 0x19b   : > { %v2867_v57 = vpop.f32.mrb[31].mxu1 }
 0x19c   : > { %v1529_v56 = vadd.f32 %v2756_v50, %v3963_v35  ;;  %v4018_v58 = vadd.f32 %v2865_v53, %v1526_v48  ;;  %v2868_v59 = vadd.f32 %v2867_v57, %v2866_v54 }
 0x19e   : > { %v2757_v60 = vpop.f32.mrb[32].mxu0  ;;  %v4020_v61 = vadd.f32 %v2868_v59, %v1529_v56 }
 0x19f   : > { %v2758_v62 = vpop.f32.mrb[33].mxu0 }
 0x1a0   : > { %v2759_v63 = vadd.f32 %v2758_v62, %v2757_v60  ;;  %v2760_v0 = vpop.f32.mrb[34].mxu0  ;;  %v2869_v2 = vpop.f32.mrb[32].mxu1 }
 0x1a1   : > { %v2761_v3 = vpop.f32.mrb[35].mxu0  ;;  %v2870_v7 = vpop.f32.mrb[33].mxu1 }
 0x1a2   : > { %v1534_v5 = vadd.f32 %v2759_v63, %v3963_v35  ;;  %v2762_v6 = vadd.f32 %v2761_v3, %v2760_v0  ;;  %v2871_v9 = vadd.f32 %v2870_v7, %v2869_v2  ;;  %v2872_v10 = vpop.f32.mrb[34].mxu1 }
 0x1a3   : > { %v2873_v13 = vpop.f32.mrb[35].mxu1 }
 0x1a4   : > { %v1537_v12 = vadd.f32 %v2762_v6, %v3963_v35  ;;  %v4024_v14 = vadd.f32 %v2871_v9, %v1534_v5  ;;  %v2874_v15 = vadd.f32 %v2873_v13, %v2872_v10 }
 0x1a6   : > { %v2763_v16 = vpop.f32.mrb[36].mxu0  ;;  %v4026_v17 = vadd.f32 %v2874_v15, %v1537_v12 }
 0x1a7   : > { %v2764_v18 = vpop.f32.mrb[37].mxu0 }
 0x1a8   : > { %v2765_v20 = vadd.f32 %v2764_v18, %v2763_v16  ;;  %v2766_v21 = vpop.f32.mrb[38].mxu0  ;;  %v2875_v23 = vpop.f32.mrb[36].mxu1 }
 0x1a9   : > { %v2767_v24 = vpop.f32.mrb[39].mxu0  ;;  %v2876_v28 = vpop.f32.mrb[37].mxu1 }
 0x1aa   : > { %v1542_v25 = vadd.f32 %v2765_v20, %v3963_v35  ;;  %v2768_v26 = vadd.f32 %v2767_v24, %v2766_v21  ;;  %v2877_v29 = vadd.f32 %v2876_v28, %v2875_v23  ;;  %v2878_v31 = vpop.f32.mrb[38].mxu1 }
 0x1ab   : > { %v2879_v33 = vpop.f32.mrb[39].mxu1 }
 0x1ac   : > { %v1545_v32 = vadd.f32 %v2768_v26, %v3963_v35  ;;  %v4030_v34 = vadd.f32 %v2877_v29, %v1542_v25  ;;  %v2880_v36 = vadd.f32 %v2879_v33, %v2878_v31 }
 0x1ae   : > { %v2769_v37 = vpop.f32.mrb[40].mxu0  ;;  %v4032_v39 = vadd.f32 %v2880_v36, %v1545_v32 }
 0x1af   : > { %v2770_v40 = vpop.f32.mrb[41].mxu0 }
 0x1b0   : > { %v2771_v42 = vadd.f32 %v2770_v40, %v2769_v37  ;;  %v2772_v43 = vpop.f32.mrb[42].mxu0  ;;  %v2881_v44 = vpop.f32.mrb[40].mxu1 }
 0x1b1   : > { %v2773_v45 = vpop.f32.mrb[43].mxu0  ;;  %v2882_v50 = vpop.f32.mrb[41].mxu1 }
 0x1b2   : > { %v1550_v47 = vadd.f32 %v2771_v42, %v3963_v35  ;;  %v2774_v48 = vadd.f32 %v2773_v45, %v2772_v43  ;;  %v2883_v51 = vadd.f32 %v2882_v50, %v2881_v44  ;;  %v2884_v53 = vpop.f32.mrb[42].mxu1 }
 0x1b3   : > { %v2885_v56 = vpop.f32.mrb[43].mxu1 }
 0x1b4   : > { %v1553_v54 = vadd.f32 %v2774_v48, %v3963_v35  ;;  %v4036_v57 = vadd.f32 %v2883_v51, %v1550_v47  ;;  %v2886_v59 = vadd.f32 %v2885_v56, %v2884_v53 }
 0x1b6   : > { %v2775_v60 = vpop.f32.mrb[44].mxu0  ;;  %v4038_v62 = vadd.f32 %v2886_v59, %v1553_v54 }
 0x1b7   : > { %v2776_v63 = vpop.f32.mrb[45].mxu0 }
 0x1b8   : > { %v2777_v0 = vadd.f32 %v2776_v63, %v2775_v60  ;;  %v2778_v2 = vpop.f32.mrb[46].mxu0  ;;  %v2887_v3 = vpop.f32.mrb[44].mxu1 }
 0x1b9   : > { %v2779_v5 = vpop.f32.mrb[47].mxu0  ;;  %v2888_v9 = vpop.f32.mrb[45].mxu1 }
 0x1ba   : > { %v1558_v6 = vadd.f32 %v2777_v0, %v3963_v35  ;;  %v2780_v7 = vadd.f32 %v2779_v5, %v2778_v2  ;;  %v2889_v10 = vadd.f32 %v2888_v9, %v2887_v3  ;;  %v2890_v12 = vpop.f32.mrb[46].mxu1 }
 0x1bb   : > { %v2891_v15 = vpop.f32.mrb[47].mxu1 }
 0x1bc   : > { %v1561_v13 = vadd.f32 %v2780_v7, %v3963_v35  ;;  %v4042_v16 = vadd.f32 %v2889_v10, %v1558_v6  ;;  %v2892_v18 = vadd.f32 %v2891_v15, %v2890_v12 }
 0x1be   : > { %v2781_v20 = vpop.f32.mrb[48].mxu0  ;;  %v4044_v21 = vadd.f32 %v2892_v18, %v1561_v13 }
 0x1bf   : > { %v2782_v23 = vpop.f32.mrb[49].mxu0 }
 0x1c0   : > { %v2783_v24 = vadd.f32 %v2782_v23, %v2781_v20  ;;  %v2784_v25 = vpop.f32.mrb[50].mxu0  ;;  %v2893_v26 = vpop.f32.mrb[48].mxu1 }
 0x1c1   : > { %v2785_v28 = vpop.f32.mrb[51].mxu0  ;;  %v2894_v32 = vpop.f32.mrb[49].mxu1 }
 0x1c2   : > { %v1566_v29 = vadd.f32 %v2783_v24, %v3963_v35  ;;  %v2786_v31 = vadd.f32 %v2785_v28, %v2784_v25  ;;  %v2895_v33 = vadd.f32 %v2894_v32, %v2893_v26  ;;  %v2896_v36 = vpop.f32.mrb[50].mxu1 }
 0x1c3   : > { %v2897_v40 = vpop.f32.mrb[51].mxu1 }
 0x1c4   : > { %v1569_v37 = vadd.f32 %v2786_v31, %v3963_v35  ;;  %v4048_v42 = vadd.f32 %v2895_v33, %v1566_v29  ;;  %v2898_v43 = vadd.f32 %v2897_v40, %v2896_v36 }
 0x1c6   : > { %v2787_v44 = vpop.f32.mrb[52].mxu0  ;;  %v4050_v45 = vadd.f32 %v2898_v43, %v1569_v37 }
 0x1c7   : > { %v2788_v47 = vpop.f32.mrb[53].mxu0 }
 0x1c8   : > { %v2789_v48 = vadd.f32 %v2788_v47, %v2787_v44  ;;  %v2790_v50 = vpop.f32.mrb[54].mxu0  ;;  %v2899_v51 = vpop.f32.mrb[52].mxu1 }
 0x1c9   : > { %v2791_v53 = vpop.f32.mrb[55].mxu0  ;;  %v2900_v59 = vpop.f32.mrb[53].mxu1 }
 0x1ca   : > { %v1574_v54 = vadd.f32 %v2789_v48, %v3963_v35  ;;  %v2792_v56 = vadd.f32 %v2791_v53, %v2790_v50  ;;  %v2901_v60 = vadd.f32 %v2900_v59, %v2899_v51  ;;  %v2902_v63 = vpop.f32.mrb[54].mxu1 }
 0x1cb   : > { %v2903_v2 = vpop.f32.mrb[55].mxu1 }
 0x1cc   : > { %v1577_v0 = vadd.f32 %v2792_v56, %v3963_v35  ;;  %v4054_v3 = vadd.f32 %v2901_v60, %v1574_v54  ;;  %v2904_v5 = vadd.f32 %v2903_v2, %v2902_v63 }
 0x1ce   : > { %v2793_v6 = vpop.f32.mrb[56].mxu0  ;;  %v4056_v7 = vadd.f32 %v2904_v5, %v1577_v0 }
 0x1cf   : > { %v2794_v9 = vpop.f32.mrb[57].mxu0 }
 0x1d0   : > { %v2795_v10 = vadd.f32 %v2794_v9, %v2793_v6  ;;  %v2796_v12 = vpop.f32.mrb[58].mxu0  ;;  %v2905_v13 = vpop.f32.mrb[56].mxu1 }
 0x1d1   : > { %v2797_v15 = vpop.f32.mrb[59].mxu0  ;;  %v2906_v23 = vpop.f32.mrb[57].mxu1 }
 0x1d2   : > { %v1582_v18 = vadd.f32 %v2795_v10, %v3963_v35  ;;  %v2798_v20 = vadd.f32 %v2797_v15, %v2796_v12  ;;  %v2907_v24 = vadd.f32 %v2906_v23, %v2905_v13  ;;  %v2908_v25 = vpop.f32.mrb[58].mxu1 }
 0x1d3   : > { %v2909_v28 = vpop.f32.mrb[59].mxu1 }
 0x1d4   : > { %v1585_v26 = vadd.f32 %v2798_v20, %v3963_v35  ;;  %v4060_v29 = vadd.f32 %v2907_v24, %v1582_v18  ;;  %v2910_v31 = vadd.f32 %v2909_v28, %v2908_v25 }
 0x1d6   : > { %v2799_v32 = vpop.f32.mrb[60].mxu0  ;;  %v4062_v33 = vadd.f32 %v2910_v31, %v1585_v26 }
 0x1d7   : > { %v2800_v36 = vpop.f32.mrb[61].mxu0 }
 0x1d8   : > { %v2801_v37 = vadd.f32 %v2800_v36, %v2799_v32  ;;  %v2802_v40 = vpop.f32.mrb[62].mxu0  ;;  %v2911_v43 = vpop.f32.mrb[60].mxu1 }
 0x1d9   : > { %v2803_v44 = vpop.f32.mrb[63].mxu0  ;;  %v2912_v50 = vpop.f32.mrb[61].mxu1 }
 0x1da   : > { %v1590_v47 = vadd.f32 %v2801_v37, %v3963_v35  ;;  %v2804_v48 = vadd.f32 %v2803_v44, %v2802_v40  ;;  %v2913_v51 = vadd.f32 %v2912_v50, %v2911_v43  ;;  %v2914_v53 = vpop.f32.mrb[62].mxu1 }
 0x1db   : > { %v2915_v56 = vpop.f32.mrb[63].mxu1 }
 0x1dc   : > { %v1593_v54 = vadd.f32 %v2804_v48, %v3963_v35  ;;  %v4066_v59 = vadd.f32 %v2913_v51, %v1590_v47  ;;  %v2916_v60 = vadd.f32 %v2915_v56, %v2914_v53 }
 0x1de   : > { %v2933_v63 = vpop.f32.mrb[64].mxu0  ;;  %v4068_v0 = vadd.f32 %v2916_v60, %v1593_v54 }
 0x1df   : > { %v2934_v2 = vpop.f32.mrb[65].mxu0 }
 0x1e0   : > { %v2935_v5 = vadd.f32 %v2934_v2, %v2933_v63  ;;  %v2936_v6 = vpop.f32.mrb[66].mxu0  ;;  %v3095_v10 = vpop.f32.mrb[64].mxu1 }
 0x1e1   : > { %v2937_v9 = vpop.f32.mrb[67].mxu0  ;;  %v1952_v15 = vpop.f32.mrb[65].mxu1 }
 0x1e2   : > { %v2938_v12 = vadd.f32 %v2937_v9, %v2936_v6  ;;  %v1792_v13 = vadd.f32 %v2935_v5, %v3969_v52  ;;  %v3096_v18 = vpop.f32.mrb[66].mxu1 }
 0x1e3   : > { %v1955_v23 = vpop.f32.mrb[67].mxu1 }
 0x1e4   : > { %v1953_v20 = vadd.f32 %v1952_v15, %v1792_v13  ;;  %v1795_v35 = vadd.f32 %v2938_v12, %v3971_v55 }
 0x1e6   : > { %v1956_v24 = vadd.f32 %v1955_v23, %v1795_v35  ;;  %v2939_v25 = vpop.f32.mrb[68].mxu0  ;;  %v2079_v28 = vmax.f32 %v1953_v20, 0.0 }
 0x1e7   : > { %v2940_v26 = vpop.f32.mrb[69].mxu0 }
 0x1e8   : > { %v2080_v31 = vmax.f32 %v1956_v24, 0.0  ;;  %v2941_v32 = vadd.f32 %v2940_v26, %v2939_v25  ;;  %v2942_v36 = vpop.f32.mrb[70].mxu0  ;;  %v3099_v40 = vpop.f32.mrb[68].mxu1 }
 0x1e9   : > { %v2943_v37 = vpop.f32.mrb[71].mxu0  ;;  %v1968_v52 = vpop.f32.mrb[69].mxu1 }
 0x1ea   : > { %v2111_v43 = vpack.c.bf16 %v2080_v31, %v2079_v28  ;;  %v1800_v44 = vadd.f32 %v2941_v32, %v3977_v8  ;;  %v2944_v47 = vadd.f32 %v2943_v37, %v2942_v36  ;;  %v3100_v48 = vpop.f32.mrb[70].mxu1 }
 0x1eb   : > { %v1971_v55 = vpop.f32.mrb[71].mxu1 }
 0x1ec   : > { %v1961_v50 = vadd.f32 %v3095_v10, %v1800_v44  ;;  %v1803_v51 = vadd.f32 %v2944_v47, %v3979_v11  ;;  %3141 = vmatprep.mubr.bf16.mxu1 %v2111_v43 }
 0x1ee   : > { %v1964_v53 = vadd.f32 %v3096_v18, %v1803_v51  ;;  %v2945_v54 = vpop.f32.mrb[72].mxu0  ;;  %v2081_v60 = vmax.f32 %v1961_v50, 0.0 }
 0x1ef   : > { %v2946_v56 = vpop.f32.mrb[73].mxu0 }
 0x1f0   : > { %v2082_v63 = vmax.f32 %v1964_v53, 0.0  ;;  %v2947_v2 = vadd.f32 %v2946_v56, %v2945_v54  ;;  %v2948_v5 = vpop.f32.mrb[74].mxu0  ;;  %v3103_v9 = vpop.f32.mrb[72].mxu1 }
 0x1f1   : > { %v2949_v6 = vpop.f32.mrb[75].mxu0  ;;  %v1984_v15 = vpop.f32.mrb[73].mxu1 }
 0x1f2   : > { %v2112_v12 = vpack.c.bf16 %v2082_v63, %v2081_v60  ;;  %v2950_v13 = vadd.f32 %v2949_v6, %v2948_v5  ;;  %v1808_v8 = vadd.f32 %v2947_v2, %v3985_v27  ;;  %v3104_v20 = vpop.f32.mrb[74].mxu1 }
 0x1f3   : > { %v1987_v35 = vpop.f32.mrb[75].mxu1 }
 0x1f4   : > { %v1969_v10 = vadd.f32 %v1968_v52, %v1808_v8  ;;  %3142 = vmatmul.mubr.bf16.vlgmr.msra.gmra.mrb[96].mxu1 %v2112_v12  ;;  %v1811_v11 = vadd.f32 %v2950_v13, %v3987_v30 }
 0x1f6   : > { %v1972_v18 = vadd.f32 %v1971_v55, %v1811_v11  ;;  %v2951_v23 = vpop.f32.mrb[76].mxu0  ;;  %v2083_v25 = vmax.f32 %v1969_v10, 0.0 }
 0x1f7   : > { %v2952_v24 = vpop.f32.mrb[77].mxu0 }
 0x1f8   : > { %v2084_v26 = vmax.f32 %v1972_v18, 0.0  ;;  %v2953_v28 = vadd.f32 %v2952_v24, %v2951_v23  ;;  %v2954_v31 = vpop.f32.mrb[78].mxu0  ;;  %v4076_v36 = vpop.f32.mrb[76].mxu1 }
 0x1f9   : > { %v2955_v32 = vpop.f32.mrb[79].mxu0  ;;  %v2000_v44 = vpop.f32.mrb[77].mxu1 }
 0x1fa   : > { %v2113_v37 = vpack.c.bf16 %v2084_v26, %v2083_v25  ;;  %v1816_v27 = vadd.f32 %v2953_v28, %v3993_v46  ;;  %v2956_v43 = vadd.f32 %v2955_v32, %v2954_v31  ;;  %v4079_v47 = vpop.f32.mrb[78].mxu1 }
 0x1fb   : > { %v2003_v50 = vpop.f32.mrb[79].mxu1 }
 0x1fc   : > { %v1977_v52 = vadd.f32 %v3099_v40, %v1816_v27  ;;  %v1819_v30 = vadd.f32 %v2956_v43, %v3995_v49  ;;  %3145 = vmatprep.mubr.bf16.mxu1 %v2113_v37 }
 0x1fe   : > { %v1980_v51 = vadd.f32 %v3100_v48, %v1819_v30  ;;  %v2957_v55 = vpop.f32.mrb[80].mxu0  ;;  %v2085_v54 = vmax.f32 %v1977_v52, 0.0 }
 0x1ff   : > { %v2958_v53 = vpop.f32.mrb[81].mxu0 }
 0x200   : > { %v2086_v56 = vmax.f32 %v1980_v51, 0.0  ;;  %v2959_v60 = vadd.f32 %v2958_v53, %v2957_v55  ;;  %v2960_v63 = vpop.f32.mrb[82].mxu0  ;;  %v4082_v5 = vpop.f32.mrb[80].mxu1 }
 0x201   : > { %v2961_v2 = vpop.f32.mrb[83].mxu0  ;;  %v4085_v13 = vpop.f32.mrb[81].mxu1 }
 0x202   : > { %v2962_v46 = vadd.f32 %v2961_v2, %v2960_v63  ;;  %v1824_v6 = vadd.f32 %v2959_v60, %v4000_v1  ;;  %v2114_v12 = vpack.c.bf16 %v2086_v56, %v2085_v54  ;;  %v4087_v40 = vpop.f32.mrb[82].mxu1 }
 0x203   : > { %v4090_v8 = vpop.f32.mrb[83].mxu1 }
 0x204   : > { %v1985_v49 = vadd.f32 %v1984_v15, %v1824_v6  ;;  %3146 = vmatmul.mubr.bf16.gmra.mrb[100].mxu1 %v2114_v12  ;;  %v1827_v48 = vadd.f32 %v2962_v46, %v4002_v4 }
 0x206   : > { %v1988_v10 = vadd.f32 %v1987_v35, %v1827_v48  ;;  %v2963_v11 = vpop.f32.mrb[84].mxu0  ;;  %v2087_v23 = vmax.f32 %v1985_v49, 0.0 }
 0x207   : > { %v2964_v18 = vpop.f32.mrb[85].mxu0 }
 0x208   : > { %v2088_v24 = vmax.f32 %v1988_v10, 0.0  ;;  %v2965_v25 = vadd.f32 %v2964_v18, %v2963_v11  ;;  %v2966_v26 = vpop.f32.mrb[86].mxu0  ;;  %v4092_v1 = vpop.f32.mrb[84].mxu1 }
 0x209   : > { %v2967_v28 = vpop.f32.mrb[87].mxu0  ;;  %v4095_v15 = vpop.f32.mrb[85].mxu1 }
 0x20a   : > { %v2115_v31 = vpack.c.bf16 %v2088_v24, %v2087_v23  ;;  %v1832_v32 = vadd.f32 %v2965_v25, %v4006_v19  ;;  %v2968_v37 = vadd.f32 %v2967_v28, %v2966_v26  ;;  %v4097_v27 = vpop.f32.mrb[86].mxu1 }
 0x20b   : > { %v4100_v43 = vpop.f32.mrb[87].mxu1 }
 0x20c   : > { %v1993_v4 = vadd.f32 %v3103_v9, %v1832_v32  ;;  %v1835_v35 = vadd.f32 %v2968_v37, %v4008_v22  ;;  %3149 = vmatprep.mubr.bf16.mxu1 %v2115_v31 }
 0x20e   : > { %v1996_v52 = vadd.f32 %v3104_v20, %v1835_v35  ;;  %v2969_v30 = vpop.f32.mrb[88].mxu0  ;;  %v2089_v55 = vmax.f32 %v1993_v4, 0.0 }
 0x20f   : > { %v2970_v51 = vpop.f32.mrb[89].mxu0 }
 0x210   : > { %v2090_v53 = vmax.f32 %v1996_v52, 0.0  ;;  %v2971_v54 = vadd.f32 %v2970_v51, %v2969_v30  ;;  %v2972_v56 = vpop.f32.mrb[90].mxu0  ;;  %v4102_v19 = vpop.f32.mrb[88].mxu1 }
 0x211   : > { %v2973_v60 = vpop.f32.mrb[91].mxu0  ;;  %v4105_v9 = vpop.f32.mrb[89].mxu1 }
 0x212   : > { %v2974_v63 = vadd.f32 %v2973_v60, %v2972_v56  ;;  %v1840_v2 = vadd.f32 %v2971_v54, %v4012_v38  ;;  %v2116_v46 = vpack.c.bf16 %v2090_v53, %v2089_v55  ;;  %v4107_v22 = vpop.f32.mrb[90].mxu1 }
 0x213   : > { %v4110_v12 = vpop.f32.mrb[91].mxu1 }
 0x214   : > { %v2001_v6 = vadd.f32 %v2000_v44, %v1840_v2  ;;  %3150 = vmatmul.mubr.bf16.gmra.mrb[104].mxu1 %v2116_v46  ;;  %v1843_v20 = vadd.f32 %v2974_v63, %v4014_v41 }
 0x216   : > { %v2004_v49 = vadd.f32 %v2003_v50, %v1843_v20  ;;  %v2975_v48 = vpop.f32.mrb[92].mxu0  ;;  %v2091_v11 = vmax.f32 %v2001_v6, 0.0 }
 0x217   : > { %v2976_v10 = vpop.f32.mrb[93].mxu0 }
 0x218   : > { %v2092_v18 = vmax.f32 %v2004_v49, 0.0  ;;  %v2977_v23 = vadd.f32 %v2976_v10, %v2975_v48  ;;  %v2978_v24 = vpop.f32.mrb[94].mxu0  ;;  %v4112_v38 = vpop.f32.mrb[92].mxu1 }
 0x219   : > { %v2979_v25 = vpop.f32.mrb[95].mxu0  ;;  %v4115_v44 = vpop.f32.mrb[93].mxu1 }
 0x21a   : > { %v2117_v26 = vpack.c.bf16 %v2092_v18, %v2091_v11  ;;  %v1848_v28 = vadd.f32 %v2977_v23, %v4018_v58  ;;  %v2980_v31 = vadd.f32 %v2979_v25, %v2978_v24  ;;  %v4117_v32 = vpop.f32.mrb[94].mxu1 }
 0x21b   : > { %v4121_v37 = vpop.f32.mrb[95].mxu1 }
 0x21c   : > { %v2009_v41 = vadd.f32 %v4076_v36, %v1848_v28  ;;  %v1851_v50 = vadd.f32 %v2980_v31, %v4020_v61  ;;  %3153 = vmatprep.mubr.bf16.mxu1 %v2117_v26 }
 0x21e   : > { %v2012_v4 = vadd.f32 %v4079_v47, %v1851_v50  ;;  %v2981_v35 = vpop.f32.mrb[96].mxu0  ;;  %v2093_v30 = vmax.f32 %v2009_v41, 0.0 }
 0x21f   : > { %v2982_v52 = vpop.f32.mrb[97].mxu0 }
 0x220   : > { %v2094_v51 = vmax.f32 %v2012_v4, 0.0  ;;  %v2983_v55 = vadd.f32 %v2982_v52, %v2981_v35  ;;  %v2984_v58 = vpop.f32.mrb[98].mxu0 }
 0x221   : > { %v2985_v53 = vpop.f32.mrb[99].mxu0 }
 0x222   : > { %v2986_v54 = vadd.f32 %v2985_v53, %v2984_v58  ;;  %v1856_v56 = vadd.f32 %v2983_v55, %v4024_v14  ;;  %v2118_v60 = vpack.c.bf16 %v2094_v51, %v2093_v30 }
 0x224   : > { %v2017_v36 = vadd.f32 %v4085_v13, %v1856_v56  ;;  %3154 = vmatmul.mubr.bf16.gmra.mrb[108].mxu1 %v2118_v60  ;;  %v1859_v61 = vadd.f32 %v2986_v54, %v4026_v17 }
 0x226   : > { %v2020_v63 = vadd.f32 %v4090_v8, %v1859_v61  ;;  %v2987_v2 = vpop.f32.mrb[100].mxu0  ;;  %v2095_v46 = vmax.f32 %v2017_v36, 0.0 }
 0x227   : > { %v2988_v47 = vpop.f32.mrb[101].mxu0 }
 0x228   : > { %v2096_v6 = vmax.f32 %v2020_v63, 0.0  ;;  %v2989_v20 = vadd.f32 %v2988_v47, %v2987_v2  ;;  %v2990_v49 = vpop.f32.mrb[102].mxu0 }
 0x229   : > { %v2991_v48 = vpop.f32.mrb[103].mxu0 }
 0x22a   : > { %v2119_v10 = vpack.c.bf16 %v2096_v6, %v2095_v46  ;;  %v1864_v11 = vadd.f32 %v2989_v20, %v4030_v34  ;;  %v2992_v18 = vadd.f32 %v2991_v48, %v2990_v49 }
 0x22c   : > { %v2025_v14 = vadd.f32 %v4082_v5, %v1864_v11  ;;  %v1867_v13 = vadd.f32 %v2992_v18, %v4032_v39  ;;  %3157 = vmatprep.mubr.bf16.mxu1 %v2119_v10 }
 0x22e   : > { %v2028_v17 = vadd.f32 %v4087_v40, %v1867_v13  ;;  %v2993_v23 = vpop.f32.mrb[104].mxu0  ;;  %v2097_v24 = vmax.f32 %v2025_v14, 0.0 }
 0x22f   : > { %v2994_v8 = vpop.f32.mrb[105].mxu0 }
 0x230   : > { %v2098_v25 = vmax.f32 %v2028_v17, 0.0  ;;  %v2995_v26 = vadd.f32 %v2994_v8, %v2993_v23  ;;  %v2996_v28 = vpop.f32.mrb[106].mxu0 }
 0x231   : > { %v2997_v31 = vpop.f32.mrb[107].mxu0 }
 0x232   : > { %v2998_v41 = vadd.f32 %v2997_v31, %v2996_v28  ;;  %v1872_v50 = vadd.f32 %v2995_v26, %v4036_v57  ;;  %v2120_v4 = vpack.c.bf16 %v2098_v25, %v2097_v24 }
 0x234   : > { %v2033_v34 = vadd.f32 %v4095_v15, %v1872_v50  ;;  %3158 = vmatmul.mubr.bf16.gmra.mrb[112].mxu1 %v2120_v4  ;;  %v1875_v5 = vadd.f32 %v2998_v41, %v4038_v62 }
 0x236   : > { %v2036_v39 = vadd.f32 %v4100_v43, %v1875_v5  ;;  %v2999_v35 = vpop.f32.mrb[108].mxu0  ;;  %v2099_v52 = vmax.f32 %v2033_v34, 0.0 }
 0x237   : > { %v3000_v40 = vpop.f32.mrb[109].mxu0 }
 0x238   : > { %v2100_v30 = vmax.f32 %v2036_v39, 0.0  ;;  %v3001_v51 = vadd.f32 %v3000_v40, %v2999_v35  ;;  %v3002_v55 = vpop.f32.mrb[110].mxu0 }
 0x239   : > { %v3003_v58 = vpop.f32.mrb[111].mxu0 }
 0x23a   : > { %v2121_v53 = vpack.c.bf16 %v2100_v30, %v2099_v52  ;;  %v1880_v54 = vadd.f32 %v3001_v51, %v4042_v16  ;;  %v3004_v56 = vadd.f32 %v3003_v58, %v3002_v55 }
 0x23c   : > { %v2041_v57 = vadd.f32 %v4092_v1, %v1880_v54  ;;  %v1883_v15 = vadd.f32 %v3004_v56, %v4044_v21  ;;  %3161 = vmatprep.mubr.bf16.mxu1 %v2121_v53  ;;  %v4160_v54 = vld [vmem:[%s4283_s4] ss:$0 sm:$0xff] }
 0x23e   : > { %v2044_v62 = vadd.f32 %v4097_v27, %v1883_v15  ;;  %v3005_v60 = vpop.f32.mrb[112].mxu0  ;;  %v2101_v36 = vmax.f32 %v2041_v57, 0.0 }
 0x23f   : > { %v3006_v43 = vpop.f32.mrb[113].mxu0 }
 0x240   : > { %v2102_v61 = vmax.f32 %v2044_v62, 0.0  ;;  %v3007_v63 = vadd.f32 %v3006_v43, %v3005_v60  ;;  %v3008_v2 = vpop.f32.mrb[114].mxu0 }
 0x241   : > { %v3009_v47 = vpop.f32.mrb[115].mxu0 }
 0x242   : > { %v3010_v46 = vadd.f32 %v3009_v47, %v3008_v2  ;;  %v1888_v6 = vadd.f32 %v3007_v63, %v4048_v42  ;;  %v2122_v20 = vpack.c.bf16 %v2102_v61, %v2101_v36 }
 0x244   : > { %v2049_v16 = vadd.f32 %v4105_v9, %v1888_v6  ;;  %3162 = vmatmul.mubr.bf16.gmra.mrb[116].mxu1 %v2122_v20  ;;  %v1891_v1 = vadd.f32 %v3010_v46, %v4050_v45 }
 0x246   : > { %v2052_v21 = vadd.f32 %v4110_v12, %v1891_v1  ;;  %v3011_v49 = vpop.f32.mrb[116].mxu0  ;;  %v2103_v48 = vmax.f32 %v2049_v16, 0.0 }
 0x247   : > { %v3012_v27 = vpop.f32.mrb[117].mxu0 }
 0x248   : > { %v2104_v10 = vmax.f32 %v2052_v21, 0.0  ;;  %v3013_v11 = vadd.f32 %v3012_v27, %v3011_v49  ;;  %v3014_v18 = vpop.f32.mrb[118].mxu0 }
 0x249   : > { %v3015_v14 = vpop.f32.mrb[119].mxu0 }
 0x24a   : > { %v2123_v13 = vpack.c.bf16 %v2104_v10, %v2103_v48  ;;  %v1896_v17 = vadd.f32 %v3013_v11, %v4054_v3  ;;  %v3016_v23 = vadd.f32 %v3015_v14, %v3014_v18 }
 0x24c   : > { %v2057_v42 = vadd.f32 %v4102_v19, %v1896_v17  ;;  %v1899_v9 = vadd.f32 %v3016_v23, %v4056_v7  ;;  %3165 = vmatprep.mubr.bf16.mxu1 %v2123_v13 }
 0x24e   : > { %v2060_v45 = vadd.f32 %v4107_v22, %v1899_v9  ;;  %v3017_v8 = vpop.f32.mrb[120].mxu0  ;;  %v2105_v24 = vmax.f32 %v2057_v42, 0.0 }
 0x24f   : > { %v3018_v12 = vpop.f32.mrb[121].mxu0 }
 0x250   : > { %v2106_v25 = vmax.f32 %v2060_v45, 0.0  ;;  %v3019_v26 = vadd.f32 %v3018_v12, %v3017_v8  ;;  %v3020_v28 = vpop.f32.mrb[122].mxu0 }
 0x251   : > { %v3021_v31 = vpop.f32.mrb[123].mxu0 }
 0x252   : > { %v3022_v41 = vadd.f32 %v3021_v31, %v3020_v28  ;;  %v1904_v50 = vadd.f32 %v3019_v26, %v4060_v29  ;;  %v2124_v4 = vpack.c.bf16 %v2106_v25, %v2105_v24 }
 0x254   : > { %v2065_v3 = vadd.f32 %v4115_v44, %v1904_v50  ;;  %3166 = vmatmul.mubr.bf16.gmra.mrb[120].mxu1 %v2124_v4  ;;  %v1907_v19 = vadd.f32 %v3022_v41, %v4062_v33 }
 0x256   : > { %v2068_v7 = vadd.f32 %v4121_v37, %v1907_v19  ;;  %v3023_v34 = vpop.f32.mrb[124].mxu0  ;;  %v2107_v5 = vmax.f32 %v2065_v3, 0.0 }
 0x257   : > { %v3024_v22 = vpop.f32.mrb[125].mxu0 }
 0x258   : > { %v2108_v39 = vmax.f32 %v2068_v7, 0.0  ;;  %v3025_v35 = vadd.f32 %v3024_v22, %v3023_v34  ;;  %v3026_v40 = vpop.f32.mrb[126].mxu0 }
 0x259   : > { %v3027_v52 = vpop.f32.mrb[127].mxu0 }
 0x25a   : > { %v2125_v30 = vpack.c.bf16 %v2108_v39, %v2107_v5  ;;  %v1912_v51 = vadd.f32 %v3025_v35, %v4066_v59  ;;  %v3028_v29 = vadd.f32 %v3027_v52, %v3026_v40 }
 0x25c   : > { %v2073_v55 = vadd.f32 %v4112_v38, %v1912_v51  ;;  %v1915_v44 = vadd.f32 %v3028_v29, %v4068_v0  ;;  %3169 = vmatprep.mubr.bf16.mxu1 %v2125_v30 }
 0x25e   : > { %v2076_v33 = vadd.f32 %v4117_v32, %v1915_v44  ;;  %v2109_v37 = vmax.f32 %v2073_v55, 0.0 }
 0x260   : > { %v2110_v58 = vmax.f32 %v2076_v33, 0.0 }
 0x262   : > { %v2126_v53 = vpack.c.bf16 %v2110_v58, %v2109_v37 }
 0x264   : > { %3170 = vmatmul.mubr.bf16.gmra.mrb[124].mxu1 %v2126_v53 }
 0x2c7   : > { %v3143_v56 = vpop.f32.mrb[96].mxu1 }
 0x2c8   : > { %v2241_v59 = vadd.f32 %v3143_v56, %v4160_v54  ;;  %v2232_v57 = vpop.f32.mrb[97].mxu1 }
 0x2c9   : > { %v2233_v38 = vadd.f32 %v4160_v54, %v2232_v57  ;;  %v3144_v0 = vpop.f32.mrb[98].mxu1 }
 0x2ca   : > { %2361 = vst [vmem:[%s4164_s28 + $0x10] sm:$0xff] %v2241_v59  ;;  %v2244_v32 = vadd.f32 %v3144_v0, %v4160_v54  ;;  %v2235_v15 = vpop.f32.mrb[99].mxu1 }
 0x2cb   : > { %2359 = vst [vmem:[%s4164_s28] sm:$0xff] %v2233_v38  ;;  %v2236_v62 = vadd.f32 %v4160_v54, %v2235_v15 }
 0x2cc   : > { %2362 = vst [vmem:[%s4164_s28 + $0x18] sm:$0xff] %v2244_v32 }
 0x2cd   : > { %2360 = vst [vmem:[%s4164_s28 + $0x8] sm:$0xff] %v2236_v62 }
 0x2d7   : > { %v3147_v60 = vpop.f32.mrb[100].mxu1 }
 0x2d8   : > { %v2257_v43 = vadd.f32 %v3147_v60, %v4160_v54  ;;  %v2248_v36 = vpop.f32.mrb[101].mxu1 }
 0x2d9   : > { %v2249_v61 = vadd.f32 %v4160_v54, %v2248_v36  ;;  %v3148_v63 = vpop.f32.mrb[102].mxu1 }
 0x2da   : > { %2365 = vst [vmem:[%s4164_s28 + $0x30] sm:$0xff] %v2257_v43  ;;  %v2260_v2 = vadd.f32 %v3148_v63, %v4160_v54  ;;  %v2251_v47 = vpop.f32.mrb[103].mxu1 }
 0x2db   : > { %2363 = vst [vmem:[%s4164_s28 + $0x20] sm:$0xff] %v2249_v61  ;;  %v2252_v46 = vadd.f32 %v4160_v54, %v2251_v47 }
 0x2dc   : > { %2366 = vst [vmem:[%s4164_s28 + $0x38] sm:$0xff] %v2260_v2 }
 0x2dd   : > { %2364 = vst [vmem:[%s4164_s28 + $0x28] sm:$0xff] %v2252_v46 }
 0x2e7   : > { %v3151_v6 = vpop.f32.mrb[104].mxu1 }
 0x2e8   : > { %v2273_v20 = vadd.f32 %v3151_v6, %v4160_v54  ;;  %v2264_v16 = vpop.f32.mrb[105].mxu1 }
 0x2e9   : > { %v2265_v1 = vadd.f32 %v4160_v54, %v2264_v16  ;;  %v3152_v21 = vpop.f32.mrb[106].mxu1 }
 0x2ea   : > { %2369 = vst [vmem:[%s4164_s28 + $0x50] sm:$0xff] %v2273_v20  ;;  %v2276_v49 = vadd.f32 %v3152_v21, %v4160_v54  ;;  %v2267_v27 = vpop.f32.mrb[107].mxu1 }
 0x2eb   : > { %2367 = vst [vmem:[%s4164_s28 + $0x40] sm:$0xff] %v2265_v1  ;;  %v2268_v48 = vadd.f32 %v4160_v54, %v2267_v27 }
 0x2ec   : > { %2370 = vst [vmem:[%s4164_s28 + $0x58] sm:$0xff] %v2276_v49 }
 0x2ed   : > { %2368 = vst [vmem:[%s4164_s28 + $0x48] sm:$0xff] %v2268_v48 }
 0x2f7   : > { %v3155_v10 = vpop.f32.mrb[108].mxu1 }
 0x2f8   : > { %v2289_v11 = vadd.f32 %v3155_v10, %v4160_v54  ;;  %v2280_v18 = vpop.f32.mrb[109].mxu1 }
 0x2f9   : > { %v2281_v14 = vadd.f32 %v4160_v54, %v2280_v18  ;;  %v3156_v13 = vpop.f32.mrb[110].mxu1 }
 0x2fa   : > { %2373 = vst [vmem:[%s4164_s28 + $0x70] sm:$0xff] %v2289_v11  ;;  %v2292_v17 = vadd.f32 %v3156_v13, %v4160_v54  ;;  %v2283_v23 = vpop.f32.mrb[111].mxu1 }
 0x2fb   : > { %2371 = vst [vmem:[%s4164_s28 + $0x60] sm:$0xff] %v2281_v14  ;;  %v2284_v42 = vadd.f32 %v4160_v54, %v2283_v23 }
 0x2fc   : > { %2374 = vst [vmem:[%s4164_s28 + $0x78] sm:$0xff] %v2292_v17 }
 0x2fd   : > { %2372 = vst [vmem:[%s4164_s28 + $0x68] sm:$0xff] %v2284_v42 }
 0x307   : > { %v3159_v9 = vpop.f32.mrb[112].mxu1 }
 0x308   : > { %v2305_v45 = vadd.f32 %v3159_v9, %v4160_v54  ;;  %v2296_v8 = vpop.f32.mrb[113].mxu1 }
 0x309   : > { %v2297_v12 = vadd.f32 %v4160_v54, %v2296_v8  ;;  %v3160_v24 = vpop.f32.mrb[114].mxu1 }
 0x30a   : > { %2377 = vst [vmem:[%s4164_s28 + $0x90] sm:$0xff] %v2305_v45  ;;  %v2308_v25 = vadd.f32 %v3160_v24, %v4160_v54  ;;  %v2299_v26 = vpop.f32.mrb[115].mxu1 }
 0x30b   : > { %2375 = vst [vmem:[%s4164_s28 + $0x80] sm:$0xff] %v2297_v12  ;;  %v2300_v28 = vadd.f32 %v4160_v54, %v2299_v26 }
 0x30c   : > { %2378 = vst [vmem:[%s4164_s28 + $0x98] sm:$0xff] %v2308_v25 }
 0x30d   : > { %2376 = vst [vmem:[%s4164_s28 + $0x88] sm:$0xff] %v2300_v28 }
 0x317   : > { %v3163_v31 = vpop.f32.mrb[116].mxu1 }
 0x318   : > { %v2321_v41 = vadd.f32 %v3163_v31, %v4160_v54  ;;  %v2312_v50 = vpop.f32.mrb[117].mxu1 }
 0x319   : > { %v2313_v4 = vadd.f32 %v4160_v54, %v2312_v50  ;;  %v3164_v3 = vpop.f32.mrb[118].mxu1 }
 0x31a   : > { %2381 = vst [vmem:[%s4164_s28 + $0xb0] sm:$0xff] %v2321_v41  ;;  %v2324_v19 = vadd.f32 %v3164_v3, %v4160_v54  ;;  %v2315_v7 = vpop.f32.mrb[119].mxu1 }
 0x31b   : > { %2379 = vst [vmem:[%s4164_s28 + $0xa0] sm:$0xff] %v2313_v4  ;;  %v2316_v34 = vadd.f32 %v4160_v54, %v2315_v7 }
 0x31c   : > { %2382 = vst [vmem:[%s4164_s28 + $0xb8] sm:$0xff] %v2324_v19 }
 0x31d   : > { %2380 = vst [vmem:[%s4164_s28 + $0xa8] sm:$0xff] %v2316_v34 }
 0x327   : > { %v3167_v22 = vpop.f32.mrb[120].mxu1 }
 0x328   : > { %v2337_v5 = vadd.f32 %v3167_v22, %v4160_v54  ;;  %v2328_v39 = vpop.f32.mrb[121].mxu1 }
 0x329   : > { %v2329_v35 = vadd.f32 %v4160_v54, %v2328_v39  ;;  %v3168_v40 = vpop.f32.mrb[122].mxu1 }
 0x32a   : > { %2385 = vst [vmem:[%s4164_s28 + $0xd0] sm:$0xff] %v2337_v5  ;;  %v2340_v52 = vadd.f32 %v3168_v40, %v4160_v54  ;;  %v2331_v30 = vpop.f32.mrb[123].mxu1 }
 0x32b   : > { %2383 = vst [vmem:[%s4164_s28 + $0xc0] sm:$0xff] %v2329_v35  ;;  %v2332_v51 = vadd.f32 %v4160_v54, %v2331_v30 }
 0x32c   : > { %2386 = vst [vmem:[%s4164_s28 + $0xd8] sm:$0xff] %v2340_v52 }
 0x32d   : > { %2384 = vst [vmem:[%s4164_s28 + $0xc8] sm:$0xff] %v2332_v51 }
 0x337   : > { %v3171_v29 = vpop.f32.mrb[124].mxu1 }
 0x338   : > { %v2353_v55 = vadd.f32 %v3171_v29, %v4160_v54  ;;  %v2344_v44 = vpop.f32.mrb[125].mxu1 }
 0x339   : > { %v2345_v33 = vadd.f32 %v4160_v54, %v2344_v44  ;;  %v3172_v37 = vpop.f32.mrb[126].mxu1 }
 0x33a   : > { %2389 = vst [vmem:[%s4164_s28 + $0xf0] sm:$0xff] %v2353_v55  ;;  %v2356_v58 = vadd.f32 %v3172_v37, %v4160_v54  ;;  %v2347_v53 = vpop.f32.mrb[127].mxu1 }
 0x33b   : > { %2387 = vst [vmem:[%s4164_s28 + $0xe0] sm:$0xff] %v2345_v33  ;;  %v2348_v56 = vadd.f32 %v4160_v54, %v2347_v53 }
 0x33c   : > { %2390 = vst [vmem:[%s4164_s28 + $0xf8] sm:$0xff] %v2356_v58 }
 0x33d   : > { %2388 = vst [vmem:[%s4164_s28 + $0xe8] sm:$0xff] %v2348_v56 }
 0x33e   : > { %3572 = shalt.err (!%p3569_p2)
}
 0x33f   : > { %s3573_s24 = scalar_lea.hbm %s4229_s12, 4096  ;;  %s3577_s9 = scalar_lea.hbm %s4284_s5, 8192 }
 0x340   : > { %p3574_p13 = scmp.ne.s32.totalorder %s4229_s12, %s3573_s24  ;;  %p3578_p4 = scmp.lt.u32.totalorder %s4229_s12, %s4284_s5 }
 0x341   : > { %p3579_p5 = scmp.lt.u32.totalorder %s3577_s9, %s3573_s24  ;;  %p3581_p11 = scmp.lt.u32.totalorder %s3573_s24, %s4229_s12 }
 0x342   : > { %p3575_p6 = pnand %p3574_p13, %p4298_p0 }
 0x343   : > { %p3580_p8 = por %p3579_p5, %p3578_p4 }
 0x344   : > { %p3576_p10 = pneg %p3575_p6 }
 0x345   : > { %p3582_p1 = por %p3581_p11, %p3580_p8 }
 0x347   : > { %p3583_p3 = pnand %p3582_p1, %p3576_p10 }
 0x349   : > { %3586 = shalt.err (!%p3583_p3)
}
 0x34a   : > { %s3639_s30 = smov 128   ;;  %s3640_s8 = smov 8  }
 0x34b   : > { %3186 = dma.vmem_to_hbm [thread:$0]  (%p4298_p0), %s4231_s7, 4096, %s4229_s12, %s2392_s22, %s3639_s30, %s3639_s30, %s3640_s8  }
 0x34c PF: > { %s2420_s10 = sand.u32 1, %s3617_s18   ;;  %p4299_p7 = scmp.ne.s32.totalorder %s4289_s25, 0 }
 0x34d   : > { %p4300_p9 = scmp.ge.s32.totalorder %s3629_s21, 2  ;;  %s2421_s13 = scalar_lea.sflag [#allocation4], %s2420_s10 }
 0x34f   : > { %p3200_p12 = pnand %p4300_p9, %p4299_p7 }
 0x351   : > { %3612 = dma.done.wait (!%p3200_p12), %s2421_s13, 4096  }
 0x352   : > { %3614 = vsyncadd (!%p3200_p12), %s2421_s13, 4294963200  ;;  %p19_p2 = scmp.ge.s32.totalorder %s3781_s14, 4   ;;  %s4301_s18 = smov %s3621_s19 }
 0x353   : > { %s4302_s19 = smov %s3625_s20  ;;  %s4303_s20 = smov %s3797_s27 }
 0x354   : > { %s4304_s21 = smov %s3781_s14  ;;  %21 = sbr.rel (!%p19_p2) target bundleno = 6 (0x6), region = 93 }
 0x35b   :  { %2426 = vsyncpa [#allocation3], 1 }
 0x35c   :  { %2428 = vsyncpa [#allocation3 + $0x1], 1 }
 0x35d   :  { %2429 = vsyncpa [#allocation6], 1 }
 0x35e   :  { %2430 = vsyncpa [#allocation4], 1 }
 0x35f   :  { %2432 = vsyncpa [#allocation4 + $0x1], 1 }

</bundles_post_ra>
